<compile_context>
chip_gen: v7x
topology: tpu7x:2x2x1
jax: 0.10.0
libtpu: 0.0.40
codegen_flags: <defaults>
</compile_context>

<pallas_src>
import functools
import numpy as np
import jax
import jax.numpy as jnp
from jax.experimental import pallas as pl
from jax.experimental.pallas import tpu as pltpu


# ----------------------------- Pallas kernel --------------------------------

def lstm_kernel(gx_ref, len_ref, whh_ref, wl_ref, bl_ref, out_ref):
    # gx_ref : (T, B, 4*Hp)  precomputed x_t @ W_ih + (b_ih + b_hh), order (i,f,o,g)
    # len_ref: (B, 1) int32
    # whh_ref: (Hp, 4*Hp), wl_ref: (Hp, OUT_P), bl_ref: (1, OUT_P)
    T, B, _ = gx_ref.shape
    Hp = whh_ref.shape[0]

    lens = len_ref[...]                              # hoisted: loaded once
    whh = whh_ref[...]                               # hoisted: loaded once

    h = jnp.zeros((B, Hp), jnp.float32)
    c = jnp.zeros((B, Hp), jnp.float32)

    # Fully unrolled recurrence: T is small and static, h/c stay in vregs.
    for t in range(T):
        gates = gx_ref[t] + jnp.dot(h, whh,
                                    preferred_element_type=jnp.float32)     # (B, 4*Hp)
        # Gate order (i, f, o, g): one sigmoid over the first 3*Hp lanes,
        # one tanh over the last Hp lanes.
        sig = jax.nn.sigmoid(gates[:, :3 * Hp])
        i_g = sig[:, 0 * Hp:1 * Hp]
        f_g = sig[:, 1 * Hp:2 * Hp]
        o_g = sig[:, 2 * Hp:3 * Hp]
        g_g = jnp.tanh(gates[:, 3 * Hp:4 * Hp])
        c = f_g * c + i_g * g_g
        h_new = o_g * jnp.tanh(c)
        # pack_padded_sequence semantics: only advance h while t < length[b].
        # (Masking c is unnecessary: once the mask turns false for a row it stays
        #  false, so a "polluted" c can never feed a live h update.)
        h = jnp.where(t < lens, h_new, h)

    # Final projection: one lane-dense (B, OUT_P) store.
    out_ref[...] = (jnp.dot(h, wl_ref[...], preferred_element_type=jnp.float32)
                    + bl_ref[...])


def run_lstm_kernel(gates_x_tbg, lengths, w_hh_p, w_l_p, b_l_p, output_size):
    T, B, G = gates_x_tbg.shape
    OUT_P = w_l_p.shape[1]

    len_b1 = lengths.astype(jnp.int32).reshape(B, 1)

    vmem = functools.partial(pl.BlockSpec, memory_space=pltpu.MemorySpace.VMEM)
    out_padded = pl.pallas_call(
        lstm_kernel,
        out_shape=jax.ShapeDtypeStruct((B, OUT_P), jnp.float32),
        in_specs=[vmem(), vmem(), vmem(), vmem(), vmem()],
        out_specs=vmem(),
    )(gates_x_tbg, len_b1, w_hh_p, w_l_p, b_l_p)
    return out_padded[:, :output_size]


# ----------------------------- parameter setup ------------------------------

# PyTorch gate order is (i, f, g, o); the kernel wants (i, f, o, g) so the three
# sigmoids are contiguous. Wrapper padding and kernel slicing change together.
GATE_ORDER = (0, 1, 3, 2)


def reorder_pad_gate_rows(w, H, Hp):
    """w: (4*H, cols) PyTorch order -> (4*Hp, cols), reordered + zero-padded per gate."""
    blocks = [jnp.pad(w[g * H:(g + 1) * H], ((0, Hp - H), (0, 0))) for g in GATE_ORDER]
    return jnp.concatenate(blocks, axis=0)


def reorder_pad_gate_vec(b, H, Hp):
    blocks = [jnp.pad(b[g * H:(g + 1) * H], (0, Hp - H)) for g in GATE_ORDER]
    return jnp.concatenate(blocks, axis=0)


def prepare_params(emb_table, w_ih, w_hh, b_ih, b_hh, w_l, b_l, H, Hp, out_p):
    """One-time (frozen-embedding) precompute: gate table + padded recurrent/output weights."""
    hi = jax.lax.Precision.HIGHEST
    w_ih_p = reorder_pad_gate_rows(w_ih, H, Hp)                              # (4*Hp, DIM)
    b_p = (reorder_pad_gate_vec(b_ih, H, Hp)
           + reorder_pad_gate_vec(b_hh, H, Hp))                              # (4*Hp,)
    gate_table = jnp.dot(emb_table, w_ih_p.T, precision=hi) + b_p            # (VOCAB, 4*Hp)

    w_hh_p = jnp.pad(reorder_pad_gate_rows(w_hh, H, Hp),
                     ((0, 0), (0, Hp - H))).T                                # (Hp, 4*Hp)
    out_sz = w_l.shape[0]
    w_l_p = jnp.pad(w_l, ((0, out_p - out_sz), (0, Hp - H))).T               # (Hp, OUT_P)
    b_l_p = jnp.pad(b_l, (0, out_p - out_sz)).reshape(1, out_p)
    return gate_table, w_hh_p, w_l_p, b_l_p


def lstm_forward_pallas(x_ids, lengths, gate_table, w_hh_p, w_l_p, b_l_p, output_size):
    # Gather + time-major layout: (B, T, 4*Hp) -> (T, B, 4*Hp), then run the kernel.
    gates_x = jnp.transpose(gate_table[x_ids], (1, 0, 2)).astype(jnp.float32)
    return run_lstm_kernel(gates_x, lengths, w_hh_p, w_l_p, b_l_p, output_size)


# ----------------------------- pure-JAX reference ---------------------------

def ref_forward(x_ids, lengths, emb_table, w_ih, w_hh, b_ih, b_hh, w_l, b_l, H):
    hi = jax.lax.Precision.HIGHEST
    emb = emb_table[x_ids]                            # (B, T, D)
    B, T, D = emb.shape
    h = jnp.zeros((B, H), jnp.float32)
    c = jnp.zeros((B, H), jnp.float32)
    for t in range(T):
        x_t = emb[:, t, :]
        gates = (jnp.dot(x_t, w_ih.T, precision=hi)
                 + jnp.dot(h, w_hh.T, precision=hi) + b_ih + b_hh)
        i_g = jax.nn.sigmoid(gates[:, 0 * H:1 * H])
        f_g = jax.nn.sigmoid(gates[:, 1 * H:2 * H])
        g_g = jnp.tanh(gates[:, 2 * H:3 * H])
        o_g = jax.nn.sigmoid(gates[:, 3 * H:4 * H])
        c_new = f_g * c + i_g * g_g
        h_new = o_g * jnp.tanh(c_new)
        mask = (t < lengths)[:, None]
        h = jnp.where(mask, h_new, h)
        c = jnp.where(mask, c_new, c)
    return jnp.dot(h, w_l.T, precision=hi) + b_l


# --------------------------------- main --------------------------------------

if __name__ == "__main__":
    # Small, deterministic config (module implies: vocab embeddings, H=100).
    VOCAB, DIM = 50, 64
    B, T = 8, 8
    H, Hp = 100, 128
    OUTPUT_SIZE, OUT_P = 3, 128

    key = jax.random.PRNGKey(0)
    ks = jax.random.split(key, 8)
    k_init = 1.0 / np.sqrt(H)

    emb_table = jax.random.normal(ks[0], (VOCAB, DIM), jnp.float32)          # frozen embeddings
    w_ih = jax.random.uniform(ks[1], (4 * H, DIM), jnp.float32, -k_init, k_init)
    w_hh = jax.random.uniform(ks[2], (4 * H, H), jnp.float32, -k_init, k_init)
    b_ih = jax.random.uniform(ks[3], (4 * H,), jnp.float32, -k_init, k_init)
    b_hh = jax.random.uniform(ks[4], (4 * H,), jnp.float32, -k_init, k_init)
    w_l = jax.random.uniform(ks[5], (OUTPUT_SIZE, H), jnp.float32, -k_init, k_init)
    b_l = jax.random.uniform(ks[6], (OUTPUT_SIZE,), jnp.float32, -k_init, k_init)

    x_ids = jax.random.randint(ks[7], (B, T), 0, VOCAB, jnp.int32)
    lengths = jnp.array([8, 5, 3, 1, 7, 6, 2, 4], jnp.int32)                 # all <= T, >= 1

    # One-time precompute (frozen embeddings -> input projection folded into a table).
    gate_table, w_hh_p, w_l_p, b_l_p = prepare_params(
        emb_table, w_ih, w_hh, b_ih, b_hh, w_l, b_l, H, Hp, OUT_P)

    logits = lstm_forward_pallas(x_ids, lengths, gate_table, w_hh_p, w_l_p, b_l_p,
                                 OUTPUT_SIZE)
    logits = jax.block_until_ready(logits)

    ref = ref_forward(x_ids, lengths, emb_table, w_ih, w_hh, b_ih, b_hh,
                      w_l, b_l, H)
    np.testing.assert_allclose(np.asarray(logits), np.asarray(ref),
                               rtol=2e-3, atol=2e-3)

    print("KERNEL_OK")
</pallas_src>

<mosaic_0001>
module attributes {stable_mosaic.version = 11 : i64} {
  func.func @lstm_kernel(%arg0: memref<8x8x512xf32, #tpu.memory_space<vmem>>, %arg1: memref<8x1xi32, #tpu.memory_space<vmem>>, %arg2: memref<128x512xf32, #tpu.memory_space<vmem>>, %arg3: memref<128x128xf32, #tpu.memory_space<vmem>>, %arg4: memref<1x128xf32, #tpu.memory_space<vmem>>, %arg5: memref<8x128xf32, #tpu.memory_space<vmem>>) attributes {dimension_semantics = [], scalar_prefetch = 0 : i64, scratch_operands = 0 : i64, tpu.core_type = #tpu.core_type<tc>} {
    %c0 = arith.constant 0 : index
    %c0_0 = arith.constant 0 : index
    %0 = vector.load %arg1[%c0, %c0_0] : memref<8x1xi32, #tpu.memory_space<vmem>>, vector<8x1xi32>
    %c0_1 = arith.constant 0 : index
    %c0_2 = arith.constant 0 : index
    %1 = vector.load %arg2[%c0_1, %c0_2] : memref<128x512xf32, #tpu.memory_space<vmem>>, vector<128x512xf32>
    %cst = arith.constant 0.000000e+00 : f32
    %2 = vector.broadcast %cst : f32 to vector<8x128xf32>
    %cst_3 = arith.constant 0.000000e+00 : f32
    %3 = vector.broadcast %cst_3 : f32 to vector<8x128xf32>
    %c0_4 = arith.constant 0 : index
    %c0_5 = arith.constant 0 : index
    %c0_6 = arith.constant 0 : index
    %4 = vector.load %arg0[%c0_4, %c0_5, %c0_6] : memref<8x8x512xf32, #tpu.memory_space<vmem>>, vector<1x8x512xf32>
    %5 = vector.shape_cast %4 : vector<1x8x512xf32> to vector<8x512xf32>
    %cst_7 = arith.constant dense<0.000000e+00> : vector<8x512xf32>
    %6 = tpu.matmul %2, %1, %cst_7 {dimension_numbers = #tpu.dot_dimension_numbers<[1], [0], [0], [1], [0, 0, 1, 1], [], []>} : vector<8x128xf32>, vector<128x512xf32>, vector<8x512xf32> -> vector<8x512xf32>
    %7 = arith.addf %5, %6 : vector<8x512xf32>
    %8 = vector.extract_strided_slice %7 {offsets = [0, 0], sizes = [8, 384], strides = [1, 1]} : vector<8x512xf32> to vector<8x384xf32>
    %9 = arith.negf %8 : vector<8x384xf32>
    %10 = math.exp %9 : vector<8x384xf32>
    %cst_8 = arith.constant 1.000000e+00 : f32
    %11 = vector.broadcast %cst_8 : f32 to vector<8x384xf32>
    %12 = arith.addf %11, %10 : vector<8x384xf32>
    %13 = arith.divf %11, %12 : vector<8x384xf32>
    %14 = vector.extract_strided_slice %13 {offsets = [0, 0], sizes = [8, 128], strides = [1, 1]} : vector<8x384xf32> to vector<8x128xf32>
    %15 = vector.extract_strided_slice %13 {offsets = [0, 128], sizes = [8, 128], strides = [1, 1]} : vector<8x384xf32> to vector<8x128xf32>
    %16 = vector.extract_strided_slice %13 {offsets = [0, 256], sizes = [8, 128], strides = [1, 1]} : vector<8x384xf32> to vector<8x128xf32>
    %17 = vector.extract_strided_slice %7 {offsets = [0, 384], sizes = [8, 128], strides = [1, 1]} : vector<8x512xf32> to vector<8x128xf32>
    %18 = math.tanh %17 : vector<8x128xf32>
    %19 = arith.mulf %15, %3 : vector<8x128xf32>
    %20 = arith.mulf %14, %18 : vector<8x128xf32>
    %21 = arith.addf %19, %20 : vector<8x128xf32>
    %22 = math.tanh %21 : vector<8x128xf32>
    %23 = arith.mulf %16, %22 : vector<8x128xf32>
    %c0_i32 = arith.constant 0 : i32
    %24 = vector.broadcast %c0_i32 : i32 to vector<8x1xi32>
    %25 = arith.cmpi sgt, %0, %24 : vector<8x1xi32>
    %26 = vector.shape_cast %25 : vector<8x1xi1> to vector<8x1xi1>
    %27 = vector.broadcast %26 : vector<8x1xi1> to vector<8x128xi1>
    %28 = arith.select %27, %23, %2 : vector<8x128xi1>, vector<8x128xf32>
    %c1 = arith.constant 1 : index
    %c0_9 = arith.constant 0 : index
    %c0_10 = arith.constant 0 : index
    %29 = vector.load %arg0[%c1, %c0_9, %c0_10] : memref<8x8x512xf32, #tpu.memory_space<vmem>>, vector<1x8x512xf32>
    %30 = vector.shape_cast %29 : vector<1x8x512xf32> to vector<8x512xf32>
    %cst_11 = arith.constant dense<0.000000e+00> : vector<8x512xf32>
    %31 = tpu.matmul %28, %1, %cst_11 {dimension_numbers = #tpu.dot_dimension_numbers<[1], [0], [0], [1], [0, 0, 1, 1], [], []>} : vector<8x128xf32>, vector<128x512xf32>, vector<8x512xf32> -> vector<8x512xf32>
    %32 = arith.addf %30, %31 : vector<8x512xf32>
    %33 = vector.extract_strided_slice %32 {offsets = [0, 0], sizes = [8, 384], strides = [1, 1]} : vector<8x512xf32> to vector<8x384xf32>
    %34 = arith.negf %33 : vector<8x384xf32>
    %35 = math.exp %34 : vector<8x384xf32>
    %cst_12 = arith.constant 1.000000e+00 : f32
    %36 = vector.broadcast %cst_12 : f32 to vector<8x384xf32>
    %37 = arith.addf %36, %35 : vector<8x384xf32>
    %38 = arith.divf %36, %37 : vector<8x384xf32>
    %39 = vector.extract_strided_slice %38 {offsets = [0, 0], sizes = [8, 128], strides = [1, 1]} : vector<8x384xf32> to vector<8x128xf32>
    %40 = vector.extract_strided_slice %38 {offsets = [0, 128], sizes = [8, 128], strides = [1, 1]} : vector<8x384xf32> to vector<8x128xf32>
    %41 = vector.extract_strided_slice %38 {offsets = [0, 256], sizes = [8, 128], strides = [1, 1]} : vector<8x384xf32> to vector<8x128xf32>
    %42 = vector.extract_strided_slice %32 {offsets = [0, 384], sizes = [8, 128], strides = [1, 1]} : vector<8x512xf32> to vector<8x128xf32>
    %43 = math.tanh %42 : vector<8x128xf32>
    %44 = arith.mulf %40, %21 : vector<8x128xf32>
    %45 = arith.mulf %39, %43 : vector<8x128xf32>
    %46 = arith.addf %44, %45 : vector<8x128xf32>
    %47 = math.tanh %46 : vector<8x128xf32>
    %48 = arith.mulf %41, %47 : vector<8x128xf32>
    %c1_i32 = arith.constant 1 : i32
    %49 = vector.broadcast %c1_i32 : i32 to vector<8x1xi32>
    %50 = arith.cmpi sgt, %0, %49 : vector<8x1xi32>
    %51 = vector.shape_cast %50 : vector<8x1xi1> to vector<8x1xi1>
    %52 = vector.broadcast %51 : vector<8x1xi1> to vector<8x128xi1>
    %53 = arith.select %52, %48, %28 : vector<8x128xi1>, vector<8x128xf32>
    %c2 = arith.constant 2 : index
    %c0_13 = arith.constant 0 : index
    %c0_14 = arith.constant 0 : index
    %54 = vector.load %arg0[%c2, %c0_13, %c0_14] : memref<8x8x512xf32, #tpu.memory_space<vmem>>, vector<1x8x512xf32>
    %55 = vector.shape_cast %54 : vector<1x8x512xf32> to vector<8x512xf32>
    %cst_15 = arith.constant dense<0.000000e+00> : vector<8x512xf32>
    %56 = tpu.matmul %53, %1, %cst_15 {dimension_numbers = #tpu.dot_dimension_numbers<[1], [0], [0], [1], [0, 0, 1, 1], [], []>} : vector<8x128xf32>, vector<128x512xf32>, vector<8x512xf32> -> vector<8x512xf32>
    %57 = arith.addf %55, %56 : vector<8x512xf32>
    %58 = vector.extract_strided_slice %57 {offsets = [0, 0], sizes = [8, 384], strides = [1, 1]} : vector<8x512xf32> to vector<8x384xf32>
    %59 = arith.negf %58 : vector<8x384xf32>
    %60 = math.exp %59 : vector<8x384xf32>
    %cst_16 = arith.constant 1.000000e+00 : f32
    %61 = vector.broadcast %cst_16 : f32 to vector<8x384xf32>
    %62 = arith.addf %61, %60 : vector<8x384xf32>
    %63 = arith.divf %61, %62 : vector<8x384xf32>
    %64 = vector.extract_strided_slice %63 {offsets = [0, 0], sizes = [8, 128], strides = [1, 1]} : vector<8x384xf32> to vector<8x128xf32>
    %65 = vector.extract_strided_slice %63 {offsets = [0, 128], sizes = [8, 128], strides = [1, 1]} : vector<8x384xf32> to vector<8x128xf32>
    %66 = vector.extract_strided_slice %63 {offsets = [0, 256], sizes = [8, 128], strides = [1, 1]} : vector<8x384xf32> to vector<8x128xf32>
    %67 = vector.extract_strided_slice %57 {offsets = [0, 384], sizes = [8, 128], strides = [1, 1]} : vector<8x512xf32> to vector<8x128xf32>
    %68 = math.tanh %67 : vector<8x128xf32>
    %69 = arith.mulf %65, %46 : vector<8x128xf32>
    %70 = arith.mulf %64, %68 : vector<8x128xf32>
    %71 = arith.addf %69, %70 : vector<8x128xf32>
    %72 = math.tanh %71 : vector<8x128xf32>
    %73 = arith.mulf %66, %72 : vector<8x128xf32>
    %c2_i32 = arith.constant 2 : i32
    %74 = vector.broadcast %c2_i32 : i32 to vector<8x1xi32>
    %75 = arith.cmpi sgt, %0, %74 : vector<8x1xi32>
    %76 = vector.shape_cast %75 : vector<8x1xi1> to vector<8x1xi1>
    %77 = vector.broadcast %76 : vector<8x1xi1> to vector<8x128xi1>
    %78 = arith.select %77, %73, %53 : vector<8x128xi1>, vector<8x128xf32>
    %c3 = arith.constant 3 : index
    %c0_17 = arith.constant 0 : index
    %c0_18 = arith.constant 0 : index
    %79 = vector.load %arg0[%c3, %c0_17, %c0_18] : memref<8x8x512xf32, #tpu.memory_space<vmem>>, vector<1x8x512xf32>
    %80 = vector.shape_cast %79 : vector<1x8x512xf32> to vector<8x512xf32>
    %cst_19 = arith.constant dense<0.000000e+00> : vector<8x512xf32>
    %81 = tpu.matmul %78, %1, %cst_19 {dimension_numbers = #tpu.dot_dimension_numbers<[1], [0], [0], [1], [0, 0, 1, 1], [], []>} : vector<8x128xf32>, vector<128x512xf32>, vector<8x512xf32> -> vector<8x512xf32>
    %82 = arith.addf %80, %81 : vector<8x512xf32>
    %83 = vector.extract_strided_slice %82 {offsets = [0, 0], sizes = [8, 384], strides = [1, 1]} : vector<8x512xf32> to vector<8x384xf32>
    %84 = arith.negf %83 : vector<8x384xf32>
    %85 = math.exp %84 : vector<8x384xf32>
    %cst_20 = arith.constant 1.000000e+00 : f32
    %86 = vector.broadcast %cst_20 : f32 to vector<8x384xf32>
    %87 = arith.addf %86, %85 : vector<8x384xf32>
    %88 = arith.divf %86, %87 : vector<8x384xf32>
    %89 = vector.extract_strided_slice %88 {offsets = [0, 0], sizes = [8, 128], strides = [1, 1]} : vector<8x384xf32> to vector<8x128xf32>
    %90 = vector.extract_strided_slice %88 {offsets = [0, 128], sizes = [8, 128], strides = [1, 1]} : vector<8x384xf32> to vector<8x128xf32>
    %91 = vector.extract_strided_slice %88 {offsets = [0, 256], sizes = [8, 128], strides = [1, 1]} : vector<8x384xf32> to vector<8x128xf32>
    %92 = vector.extract_strided_slice %82 {offsets = [0, 384], sizes = [8, 128], strides = [1, 1]} : vector<8x512xf32> to vector<8x128xf32>
    %93 = math.tanh %92 : vector<8x128xf32>
    %94 = arith.mulf %90, %71 : vector<8x128xf32>
    %95 = arith.mulf %89, %93 : vector<8x128xf32>
    %96 = arith.addf %94, %95 : vector<8x128xf32>
    %97 = math.tanh %96 : vector<8x128xf32>
    %98 = arith.mulf %91, %97 : vector<8x128xf32>
    %c3_i32 = arith.constant 3 : i32
    %99 = vector.broadcast %c3_i32 : i32 to vector<8x1xi32>
    %100 = arith.cmpi sgt, %0, %99 : vector<8x1xi32>
    %101 = vector.shape_cast %100 : vector<8x1xi1> to vector<8x1xi1>
    %102 = vector.broadcast %101 : vector<8x1xi1> to vector<8x128xi1>
    %103 = arith.select %102, %98, %78 : vector<8x128xi1>, vector<8x128xf32>
    %c4 = arith.constant 4 : index
    %c0_21 = arith.constant 0 : index
    %c0_22 = arith.constant 0 : index
    %104 = vector.load %arg0[%c4, %c0_21, %c0_22] : memref<8x8x512xf32, #tpu.memory_space<vmem>>, vector<1x8x512xf32>
    %105 = vector.shape_cast %104 : vector<1x8x512xf32> to vector<8x512xf32>
    %cst_23 = arith.constant dense<0.000000e+00> : vector<8x512xf32>
    %106 = tpu.matmul %103, %1, %cst_23 {dimension_numbers = #tpu.dot_dimension_numbers<[1], [0], [0], [1], [0, 0, 1, 1], [], []>} : vector<8x128xf32>, vector<128x512xf32>, vector<8x512xf32> -> vector<8x512xf32>
    %107 = arith.addf %105, %106 : vector<8x512xf32>
    %108 = vector.extract_strided_slice %107 {offsets = [0, 0], sizes = [8, 384], strides = [1, 1]} : vector<8x512xf32> to vector<8x384xf32>
    %109 = arith.negf %108 : vector<8x384xf32>
    %110 = math.exp %109 : vector<8x384xf32>
    %cst_24 = arith.constant 1.000000e+00 : f32
    %111 = vector.broadcast %cst_24 : f32 to vector<8x384xf32>
    %112 = arith.addf %111, %110 : vector<8x384xf32>
    %113 = arith.divf %111, %112 : vector<8x384xf32>
    %114 = vector.extract_strided_slice %113 {offsets = [0, 0], sizes = [8, 128], strides = [1, 1]} : vector<8x384xf32> to vector<8x128xf32>
    %115 = vector.extract_strided_slice %113 {offsets = [0, 128], sizes = [8, 128], strides = [1, 1]} : vector<8x384xf32> to vector<8x128xf32>
    %116 = vector.extract_strided_slice %113 {offsets = [0, 256], sizes = [8, 128], strides = [1, 1]} : vector<8x384xf32> to vector<8x128xf32>
    %117 = vector.extract_strided_slice %107 {offsets = [0, 384], sizes = [8, 128], strides = [1, 1]} : vector<8x512xf32> to vector<8x128xf32>
    %118 = math.tanh %117 : vector<8x128xf32>
    %119 = arith.mulf %115, %96 : vector<8x128xf32>
    %120 = arith.mulf %114, %118 : vector<8x128xf32>
    %121 = arith.addf %119, %120 : vector<8x128xf32>
    %122 = math.tanh %121 : vector<8x128xf32>
    %123 = arith.mulf %116, %122 : vector<8x128xf32>
    %c4_i32 = arith.constant 4 : i32
    %124 = vector.broadcast %c4_i32 : i32 to vector<8x1xi32>
    %125 = arith.cmpi sgt, %0, %124 : vector<8x1xi32>
    %126 = vector.shape_cast %125 : vector<8x1xi1> to vector<8x1xi1>
    %127 = vector.broadcast %126 : vector<8x1xi1> to vector<8x128xi1>
    %128 = arith.select %127, %123, %103 : vector<8x128xi1>, vector<8x128xf32>
    %c5 = arith.constant 5 : index
    %c0_25 = arith.constant 0 : index
    %c0_26 = arith.constant 0 : index
    %129 = vector.load %arg0[%c5, %c0_25, %c0_26] : memref<8x8x512xf32, #tpu.memory_space<vmem>>, vector<1x8x512xf32>
    %130 = vector.shape_cast %129 : vector<1x8x512xf32> to vector<8x512xf32>
    %cst_27 = arith.constant dense<0.000000e+00> : vector<8x512xf32>
    %131 = tpu.matmul %128, %1, %cst_27 {dimension_numbers = #tpu.dot_dimension_numbers<[1], [0], [0], [1], [0, 0, 1, 1], [], []>} : vector<8x128xf32>, vector<128x512xf32>, vector<8x512xf32> -> vector<8x512xf32>
    %132 = arith.addf %130, %131 : vector<8x512xf32>
    %133 = vector.extract_strided_slice %132 {offsets = [0, 0], sizes = [8, 384], strides = [1, 1]} : vector<8x512xf32> to vector<8x384xf32>
    %134 = arith.negf %133 : vector<8x384xf32>
    %135 = math.exp %134 : vector<8x384xf32>
    %cst_28 = arith.constant 1.000000e+00 : f32
    %136 = vector.broadcast %cst_28 : f32 to vector<8x384xf32>
    %137 = arith.addf %136, %135 : vector<8x384xf32>
    %138 = arith.divf %136, %137 : vector<8x384xf32>
    %139 = vector.extract_strided_slice %138 {offsets = [0, 0], sizes = [8, 128], strides = [1, 1]} : vector<8x384xf32> to vector<8x128xf32>
    %140 = vector.extract_strided_slice %138 {offsets = [0, 128], sizes = [8, 128], strides = [1, 1]} : vector<8x384xf32> to vector<8x128xf32>
    %141 = vector.extract_strided_slice %138 {offsets = [0, 256], sizes = [8, 128], strides = [1, 1]} : vector<8x384xf32> to vector<8x128xf32>
    %142 = vector.extract_strided_slice %132 {offsets = [0, 384], sizes = [8, 128], strides = [1, 1]} : vector<8x512xf32> to vector<8x128xf32>
    %143 = math.tanh %142 : vector<8x128xf32>
    %144 = arith.mulf %140, %121 : vector<8x128xf32>
    %145 = arith.mulf %139, %143 : vector<8x128xf32>
    %146 = arith.addf %144, %145 : vector<8x128xf32>
    %147 = math.tanh %146 : vector<8x128xf32>
    %148 = arith.mulf %141, %147 : vector<8x128xf32>
    %c5_i32 = arith.constant 5 : i32
    %149 = vector.broadcast %c5_i32 : i32 to vector<8x1xi32>
    %150 = arith.cmpi sgt, %0, %149 : vector<8x1xi32>
    %151 = vector.shape_cast %150 : vector<8x1xi1> to vector<8x1xi1>
    %152 = vector.broadcast %151 : vector<8x1xi1> to vector<8x128xi1>
    %153 = arith.select %152, %148, %128 : vector<8x128xi1>, vector<8x128xf32>
    %c6 = arith.constant 6 : index
    %c0_29 = arith.constant 0 : index
    %c0_30 = arith.constant 0 : index
    %154 = vector.load %arg0[%c6, %c0_29, %c0_30] : memref<8x8x512xf32, #tpu.memory_space<vmem>>, vector<1x8x512xf32>
    %155 = vector.shape_cast %154 : vector<1x8x512xf32> to vector<8x512xf32>
    %cst_31 = arith.constant dense<0.000000e+00> : vector<8x512xf32>
    %156 = tpu.matmul %153, %1, %cst_31 {dimension_numbers = #tpu.dot_dimension_numbers<[1], [0], [0], [1], [0, 0, 1, 1], [], []>} : vector<8x128xf32>, vector<128x512xf32>, vector<8x512xf32> -> vector<8x512xf32>
    %157 = arith.addf %155, %156 : vector<8x512xf32>
    %158 = vector.extract_strided_slice %157 {offsets = [0, 0], sizes = [8, 384], strides = [1, 1]} : vector<8x512xf32> to vector<8x384xf32>
    %159 = arith.negf %158 : vector<8x384xf32>
    %160 = math.exp %159 : vector<8x384xf32>
    %cst_32 = arith.constant 1.000000e+00 : f32
    %161 = vector.broadcast %cst_32 : f32 to vector<8x384xf32>
    %162 = arith.addf %161, %160 : vector<8x384xf32>
    %163 = arith.divf %161, %162 : vector<8x384xf32>
    %164 = vector.extract_strided_slice %163 {offsets = [0, 0], sizes = [8, 128], strides = [1, 1]} : vector<8x384xf32> to vector<8x128xf32>
    %165 = vector.extract_strided_slice %163 {offsets = [0, 128], sizes = [8, 128], strides = [1, 1]} : vector<8x384xf32> to vector<8x128xf32>
    %166 = vector.extract_strided_slice %163 {offsets = [0, 256], sizes = [8, 128], strides = [1, 1]} : vector<8x384xf32> to vector<8x128xf32>
    %167 = vector.extract_strided_slice %157 {offsets = [0, 384], sizes = [8, 128], strides = [1, 1]} : vector<8x512xf32> to vector<8x128xf32>
    %168 = math.tanh %167 : vector<8x128xf32>
    %169 = arith.mulf %165, %146 : vector<8x128xf32>
    %170 = arith.mulf %164, %168 : vector<8x128xf32>
    %171 = arith.addf %169, %170 : vector<8x128xf32>
    %172 = math.tanh %171 : vector<8x128xf32>
    %173 = arith.mulf %166, %172 : vector<8x128xf32>
    %c6_i32 = arith.constant 6 : i32
    %174 = vector.broadcast %c6_i32 : i32 to vector<8x1xi32>
    %175 = arith.cmpi sgt, %0, %174 : vector<8x1xi32>
    %176 = vector.shape_cast %175 : vector<8x1xi1> to vector<8x1xi1>
    %177 = vector.broadcast %176 : vector<8x1xi1> to vector<8x128xi1>
    %178 = arith.select %177, %173, %153 : vector<8x128xi1>, vector<8x128xf32>
    %c7 = arith.constant 7 : index
    %c0_33 = arith.constant 0 : index
    %c0_34 = arith.constant 0 : index
    %179 = vector.load %arg0[%c7, %c0_33, %c0_34] : memref<8x8x512xf32, #tpu.memory_space<vmem>>, vector<1x8x512xf32>
    %180 = vector.shape_cast %179 : vector<1x8x512xf32> to vector<8x512xf32>
    %cst_35 = arith.constant dense<0.000000e+00> : vector<8x512xf32>
    %181 = tpu.matmul %178, %1, %cst_35 {dimension_numbers = #tpu.dot_dimension_numbers<[1], [0], [0], [1], [0, 0, 1, 1], [], []>} : vector<8x128xf32>, vector<128x512xf32>, vector<8x512xf32> -> vector<8x512xf32>
    %182 = arith.addf %180, %181 : vector<8x512xf32>
    %183 = vector.extract_strided_slice %182 {offsets = [0, 0], sizes = [8, 384], strides = [1, 1]} : vector<8x512xf32> to vector<8x384xf32>
    %184 = arith.negf %183 : vector<8x384xf32>
    %185 = math.exp %184 : vector<8x384xf32>
    %cst_36 = arith.constant 1.000000e+00 : f32
    %186 = vector.broadcast %cst_36 : f32 to vector<8x384xf32>
    %187 = arith.addf %186, %185 : vector<8x384xf32>
    %188 = arith.divf %186, %187 : vector<8x384xf32>
    %189 = vector.extract_strided_slice %188 {offsets = [0, 0], sizes = [8, 128], strides = [1, 1]} : vector<8x384xf32> to vector<8x128xf32>
    %190 = vector.extract_strided_slice %188 {offsets = [0, 128], sizes = [8, 128], strides = [1, 1]} : vector<8x384xf32> to vector<8x128xf32>
    %191 = vector.extract_strided_slice %188 {offsets = [0, 256], sizes = [8, 128], strides = [1, 1]} : vector<8x384xf32> to vector<8x128xf32>
    %192 = vector.extract_strided_slice %182 {offsets = [0, 384], sizes = [8, 128], strides = [1, 1]} : vector<8x512xf32> to vector<8x128xf32>
    %193 = math.tanh %192 : vector<8x128xf32>
    %194 = arith.mulf %190, %171 : vector<8x128xf32>
    %195 = arith.mulf %189, %193 : vector<8x128xf32>
    %196 = arith.addf %194, %195 : vector<8x128xf32>
    %197 = math.tanh %196 : vector<8x128xf32>
    %198 = arith.mulf %191, %197 : vector<8x128xf32>
    %c7_i32 = arith.constant 7 : i32
    %199 = vector.broadcast %c7_i32 : i32 to vector<8x1xi32>
    %200 = arith.cmpi sgt, %0, %199 : vector<8x1xi32>
    %201 = vector.shape_cast %200 : vector<8x1xi1> to vector<8x1xi1>
    %202 = vector.broadcast %201 : vector<8x1xi1> to vector<8x128xi1>
    %203 = arith.select %202, %198, %178 : vector<8x128xi1>, vector<8x128xf32>
    %c0_37 = arith.constant 0 : index
    %c0_38 = arith.constant 0 : index
    %204 = vector.load %arg3[%c0_37, %c0_38] : memref<128x128xf32, #tpu.memory_space<vmem>>, vector<128x128xf32>
    %cst_39 = arith.constant dense<0.000000e+00> : vector<8x128xf32>
    %205 = tpu.matmul %203, %204, %cst_39 {dimension_numbers = #tpu.dot_dimension_numbers<[1], [0], [0], [1], [0, 0, 1, 1], [], []>} : vector<8x128xf32>, vector<128x128xf32>, vector<8x128xf32> -> vector<8x128xf32>
    %c0_40 = arith.constant 0 : index
    %c0_41 = arith.constant 0 : index
    %206 = vector.load %arg4[%c0_40, %c0_41] : memref<1x128xf32, #tpu.memory_space<vmem>>, vector<1x128xf32>
    %207 = vector.broadcast %206 : vector<1x128xf32> to vector<8x128xf32>
    %208 = arith.addf %205, %207 : vector<8x128xf32>
    %c0_42 = arith.constant 0 : index
    %c0_43 = arith.constant 0 : index
    %209 = vector.load %arg5[%c0_42, %c0_43] : memref<8x128xf32, #tpu.memory_space<vmem>>, vector<8x128xf32>
    tpu.vector_store %arg5[%c0_42, %c0_43], %208 {strides = array<i32>} : memref<8x128xf32, #tpu.memory_space<vmem>>, vector<8x128xf32>,
    return
  }
}

</mosaic_0001>

<bundles_post_ra>
// kernel: tpu_custom_call.1
= control target key start
LH: loop header
LB: loop body
LE: loop exit
PB: predicated region body
PF: predicated region fallthrough
CT: control target
= control target key end

     0   :  { %10 = vsyncpa [#allocation3], 0  ;;  %s3066_s0 = inlined_call_operand.hbm [shape: f32[8,8,512], index: 0, kind: input, shape index: {}]   ;;  %s3067_s1 = inlined_call_operand.vmem [shape: s32[8,1], index: 1, kind: input, shape index: {}]   ;;  %s3068_s2 = inlined_call_operand.hbm [shape: f32[128,512], index: 2, kind: input, shape index: {}]   ;;  %s3069_s3 = inlined_call_operand.hbm [shape: f32[128,128], index: 3, kind: input, shape index: {}]   ;;  %s3070_s4 = inlined_call_operand.vmem [shape: f32[1,128], index: 4, kind: input, shape index: {}]   ;;  %s3071_s5 = inlined_call_operand.hbm [shape: f32[8,128], index: 5, kind: output, shape index: {}]  }
   0x1   :  { %11 = vsyncpa [#allocation6], 0 }
   0x2   :  { %12 = vsyncpa [#allocation4], 0  ;;  %s2543_s18 = smov [#allocation5]   ;;  %s2544_s20 = smov [#allocation2]  }
   0x3   :  { %s32_s19 = sshll.u32 %s2543_s18, 4  ;;  %s18_s21 = sshll.u32 %s2544_s20, 4  ;;  %s33_s19 = int_to_ptr.vmem [resolvable:$true] %s32_s19  ;;  %s2585_s21 = int_to_ptr.vmem [resolvable:$true] %s18_s21 }
   0x4   :  { %s2449_s24 = scalar_lea.hbm %s3068_s2, 8192 }
   0x5   :  { %p2450_p0 = scmp.ne.s32.totalorder %s3068_s2, %s2449_s24  ;;  %p2453_p1 = scmp.lt.u32.totalorder %s2449_s24, %s3068_s2 }
   0x7   :  { %p2455_p2 = pnand %p2453_p1, %p2450_p0 }
   0x9   :  { %2458 = shalt.err (!%p2455_p2)
}
   0xa   :  { %s2459_s29 = scalar_lea.vmem %s33_s19, 8192  ;;  %p2464_p4 = scmp.lt.s32.totalorder %s33_s19, %s33_s19 }
   0xb   :  { %p2460_p3 = scmp.ne.s32.totalorder %s33_s19, %s2459_s29  ;;  %p2465_p5 = scmp.lt.s32.totalorder %s2459_s29, %s2459_s29 }
   0xd   :  { %p2466_p6 = por %p2465_p5, %p2464_p4 }
   0xf   :  { %p2467_p7 = pnand %p2466_p6, %p2460_p3 }
  0x11   :  { %2470 = shalt.err (!%p2467_p7)
}
  0x12   :  { %s2545_s30 = smov 512   ;;  %s2546_s6 = smov 32  }
  0x13   :  { %38 = dma.hbm_to_vmem [thread:$0]  %s3068_s2, 8192, %s33_s19, [#allocation6], %s2545_s30, %s2545_s30, %s2546_s6  }
  0x14   :  { %s2471_s11 = scalar_lea.hbm %s3066_s0, 4096 }
  0x15   :  { %p2472_p8 = scmp.ne.s32.totalorder %s3066_s0, %s2471_s11  ;;  %p2475_p9 = scmp.lt.u32.totalorder %s2471_s11, %s3066_s0 }
  0x17   :  { %p2477_p10 = pnand %p2475_p9, %p2472_p8 }
  0x19   :  { %2480 = shalt.err (!%p2477_p10)
}
  0x1a   :  { %s2481_s16 = scalar_lea.vmem %s2585_s21, 4096  ;;  %p2486_p12 = scmp.lt.s32.totalorder %s2585_s21, %s2585_s21 }
  0x1b   :  { %p2482_p11 = scmp.ne.s32.totalorder %s2585_s21, %s2481_s16  ;;  %p2487_p13 = scmp.lt.s32.totalorder %s2481_s16, %s2481_s16 }
  0x1d   :  { %p2488_p0 = por %p2487_p13, %p2486_p12 }
  0x1f   :  { %p2489_p1 = pnand %p2488_p0, %p2482_p11 }
  0x21   :  { %2492 = shalt.err (!%p2489_p1)
}
  0x22   :  { %24 = dma.hbm_to_vmem [thread:$0]  %s3066_s0, 4096, %s2585_s21, [#allocation3], %s2545_s30, %s2545_s30, %s2546_s6  }
  0x23   :  { %s2547_s18 = smov [#allocation7]   ;;  %s2493_s23 = scalar_lea.hbm %s3069_s3, 2048 }
  0x24   :  { %s44_s19 = sshll.u32 %s2547_s18, 4  ;;  %p2494_p2 = scmp.ne.s32.totalorder %s3069_s3, %s2493_s23  ;;  %s45_s19 = int_to_ptr.vmem [resolvable:$true] %s44_s19 }
  0x25   :  { %p2497_p3 = scmp.lt.u32.totalorder %s2493_s23, %s3069_s3 }
  0x27   :  { %p2499_p4 = pnand %p2497_p3, %p2494_p2 }
  0x29   :  { %2502 = shalt.err (!%p2499_p4)
}
  0x2a   :  { %s2503_s28 = scalar_lea.vmem %s45_s19, 2048  ;;  %p2508_p6 = scmp.lt.s32.totalorder %s45_s19, %s45_s19 }
  0x2b   :  { %p2504_p5 = scmp.ne.s32.totalorder %s45_s19, %s2503_s28  ;;  %p2509_p7 = scmp.lt.s32.totalorder %s2503_s28, %s2503_s28 }
  0x2d   :  { %p2510_p8 = por %p2509_p7, %p2508_p6 }
  0x2f   :  { %p2511_p9 = pnand %p2510_p8, %p2504_p5 }
  0x31   :  { %2514 = shalt.err (!%p2511_p9)
}
  0x32   :  { %s2548_s0 = smov 128   ;;  %s2549_s21 = smov 8  }
  0x33   :  { %50 = dma.hbm_to_vmem [thread:$0]  %s3069_s3, 2048, %s45_s19, [#allocation6], %s2548_s0, %s2548_s0, %s2549_s21  }
  0x34   :  { %2537 = dma.done.wait [#allocation3], 4096  }
  0x35   :  { %2538 = vsyncadd [#allocation3], 4294963200 }
  0x36   :  { %2539 = dma.done.wait [#allocation6], 10240  }
  0x37   :  { %2540 = vsyncadd [#allocation6], 4294957056  ;;  %v2550_v0 = vmov 0.0   ;;  %v2551_v1 = vmov 0   ;;  %v64_v2 = vld [vmem:[#allocation5 + $0x8] sm:$0xff]  ;;  %v63_v4 = vld [vmem:[#allocation5] sm:$0xff] }
  0x38   :  { %195 = vmatprep.mubr.f32.mxu0 %v2550_v0  ;;  %266 = vmatprep.mubr.f32.mxu1 %v2550_v0  ;;  %v68_v3 = vld [vmem:[#allocation5 + $0x28] sm:$0xff]  ;;  %v67_v6 = vld [vmem:[#allocation5 + $0x20] sm:$0xff]  ;;  %v66_v20 = vld [vmem:[#allocation5 + $0x18] sm:$0xff]  ;;  %vm2553_vm15 = vmmov 0   ;;  %s2554_s8 = smov [#allocation8]  }
  0x39   :  { %2319 = vset.pattern.permute.xlu0 %v2551_v1  ;;  %2320 = vset.pattern.permute.xlu1 %v2551_v1  ;;  %v2632_v5 = vpack.c.bf16 %v68_v3, %v64_v2  ;;  %v72_v7 = vld [vmem:[#allocation5 + $0x48] sm:$0xff]  ;;  %v2634_v9 = vpack.c.bf16 %v67_v6, %v63_v4  ;;  %v71_v11 = vld [vmem:[#allocation5 + $0x40] sm:$0xff]  ;;  %v70_v21 = vld [vmem:[#allocation5 + $0x38] sm:$0xff]  ;;  %s1682_s9 = sshll.u32 %s2554_s8, 4  ;;  %s1683_s9 = int_to_ptr.vmem [resolvable:$true] %s1682_s9 }
  0x3a   :  { %v76_v8 = vld [vmem:[#allocation5 + $0x68] sm:$0xff]  ;;  %v75_v12 = vld [vmem:[#allocation5 + $0x60] sm:$0xff]  ;;  %v2645_v23 = vpack.c.bf16 %v70_v21, %v66_v20  ;;  %v65_v24 = vld [vmem:[#allocation5 + $0x10] sm:$0xff]  ;;  %s2515_s10 = scalar_lea.vmem %s1683_s9, 128  ;;  %p2520_p11 = scmp.lt.s32.totalorder %s1683_s9, %s1683_s9 }
  0x3b   :  { %v2636_v10 = vpack.c.bf16 %v76_v8, %v72_v7  ;;  %v80_v13 = vld [vmem:[#allocation5 + $0x88] sm:$0xff]  ;;  %1772 = vmatprep.subr.bf16.mxu0 %v2632_v5  ;;  %v2640_v15 = vpack.c.bf16 %v75_v12, %v71_v11  ;;  %v79_v16 = vld [vmem:[#allocation5 + $0x80] sm:$0xff]  ;;  %v69_v25 = vld [vmem:[#allocation5 + $0x30] sm:$0xff]  ;;  %p2516_p10 = scmp.ne.s32.totalorder %s1683_s9, %s2515_s10  ;;  %p2521_p12 = scmp.lt.s32.totalorder %s2515_s10, %s2515_s10 }
  0x3c   :  { %v84_v14 = vld [vmem:[#allocation5 + $0xa8] sm:$0xff]  ;;  %1774 = vmatpush1.bf16.msra.mxu0 %v2634_v9  ;;  %v83_v17 = vld [vmem:[#allocation5 + $0xa0] sm:$0xff]  ;;  %v2647_v26 = vpack.c.bf16 %v69_v25, %v65_v24  ;;  %1804 = vmatprep.subr.bf16.mxu1 %v2645_v23  ;;  %v74_v28 = vld [vmem:[#allocation5 + $0x58] sm:$0xff] }
  0x3d   :  { %1776 = vmatprep.subr.bf16.mxu0 %v2636_v10  ;;  %v2643_v18 = vpack.c.bf16 %v84_v14, %v80_v13  ;;  %v88_v19 = vld [vmem:[#allocation5 + $0xc8] sm:$0xff]  ;;  %v2650_v27 = vpack.c.bf16 %v83_v17, %v79_v16  ;;  %v78_v29 = vld [vmem:[#allocation5 + $0x78] sm:$0xff]  ;;  %v73_v30 = vld [vmem:[#allocation5 + $0x50] sm:$0xff]  ;;  %p2522_p13 = por %p2521_p12, %p2520_p11 }
  0x3e   :  { %v92_v22 = vld [vmem:[#allocation5 + $0xe8] sm:$0xff]  ;;  %v87_v32 = vld [vmem:[#allocation5 + $0xc0] sm:$0xff]  ;;  %1806 = vmatpush1.bf16.msra.mxu1 %v2647_v26  ;;  %v2657_v34 = vpack.c.bf16 %v78_v29, %v74_v28  ;;  %v77_v35 = vld [vmem:[#allocation5 + $0x70] sm:$0xff] }
  0x3f   :  { %v2654_v31 = vpack.c.bf16 %v92_v22, %v88_v19  ;;  %v91_v33 = vld [vmem:[#allocation5 + $0xe0] sm:$0xff]  ;;  %v96_v36 = vld [vmem:[#allocation5 + $0x108] sm:$0xff]  ;;  %v2659_v38 = vpack.c.bf16 %v77_v35, %v73_v30  ;;  %v82_v39 = vld [vmem:[#allocation5 + $0x98] sm:$0xff]  ;;  %p2523_p0 = pnand %p2522_p13, %p2516_p10 }
  0x40   :  { %1778 = vmatpush1.bf16.msra.mxu0 %v2640_v15  ;;  %v100_v37 = vld [vmem:[#allocation5 + $0x128] sm:$0xff]  ;;  %1808 = vmatprep.subr.bf16.mxu1 %v2657_v34  ;;  %v86_v40 = vld [vmem:[#allocation5 + $0xb8] sm:$0xff]  ;;  %v81_v41 = vld [vmem:[#allocation5 + $0x90] sm:$0xff]  ;;  %v2663_v43 = vpack.c.bf16 %v91_v33, %v87_v32 }
  0x41   :  { %1780 = vmatprep.subr.bf16.mxu0 %v2643_v18  ;;  %v85_v42 = vld [vmem:[#allocation5 + $0xb0] sm:$0xff]  ;;  %v95_v44 = vld [vmem:[#allocation5 + $0x100] sm:$0xff]  ;;  %v2665_v46 = vpack.c.bf16 %v86_v40, %v82_v39  ;;  %v2668_v47 = vpack.c.bf16 %v100_v37, %v96_v36  ;;  %v104_v48 = vld [vmem:[#allocation5 + $0x148] sm:$0xff] }
  0x42   :  { %v99_v45 = vld [vmem:[#allocation5 + $0x120] sm:$0xff]  ;;  %1810 = vmatpush1.bf16.msra.mxu1 %v2659_v38  ;;  %v2671_v49 = vpack.c.bf16 %v85_v42, %v81_v41  ;;  %v90_v50 = vld [vmem:[#allocation5 + $0xd8] sm:$0xff]  ;;  %v108_v52 = vld [vmem:[#allocation5 + $0x168] sm:$0xff] }
  0x43   :  { %v94_v51 = vld [vmem:[#allocation5 + $0xf8] sm:$0xff]  ;;  %1812 = vmatprep.subr.bf16.mxu1 %v2665_v46  ;;  %v89_v54 = vld [vmem:[#allocation5 + $0xd0] sm:$0xff]  ;;  %v2677_v56 = vpack.c.bf16 %v99_v45, %v95_v44  ;;  %v2680_v59 = vpack.c.bf16 %v108_v52, %v104_v48  ;;  %v103_v60 = vld [vmem:[#allocation5 + $0x140] sm:$0xff] }
  0x44   :  { %1782 = vmatpush1.bf16.msra.mxu0 %v2650_v27  ;;  %v2674_v53 = vpack.c.bf16 %v94_v51, %v90_v50  ;;  %v93_v55 = vld [vmem:[#allocation5 + $0xf0] sm:$0xff]  ;;  %v98_v57 = vld [vmem:[#allocation5 + $0x118] sm:$0xff]  ;;  %v107_v61 = vld [vmem:[#allocation5 + $0x160] sm:$0xff] }
  0x45   :  { %1784 = vmatprep.subr.bf16.mxu0 %v2654_v31  ;;  %v102_v58 = vld [vmem:[#allocation5 + $0x138] sm:$0xff]  ;;  %v112_v62 = vld [vmem:[#allocation5 + $0x188] sm:$0xff]  ;;  %v2683_v63 = vpack.c.bf16 %v93_v55, %v89_v54  ;;  %v97_v4 = vld [vmem:[#allocation5 + $0x110] sm:$0xff]  ;;  %v2689_v11 = vpack.c.bf16 %v107_v61, %v103_v60 }
  0x46   :  { %1814 = vmatpush1.bf16.msra.mxu1 %v2671_v49  ;;  %v116_v2 = vld [vmem:[#allocation5 + $0x1a8] sm:$0xff]  ;;  %v2686_v3 = vpack.c.bf16 %v102_v58, %v98_v57  ;;  %v101_v6 = vld [vmem:[#allocation5 + $0x130] sm:$0xff]  ;;  %v106_v7 = vld [vmem:[#allocation5 + $0x158] sm:$0xff] }
  0x47   :  { %1816 = vmatprep.subr.bf16.mxu1 %v2674_v53  ;;  %v110_v8 = vld [vmem:[#allocation5 + $0x178] sm:$0xff]  ;;  %v111_v12 = vld [vmem:[#allocation5 + $0x180] sm:$0xff]  ;;  %v2692_v13 = vpack.c.bf16 %v116_v2, %v112_v62  ;;  %v120_v16 = vld [vmem:[#allocation5 + $0x1c8] sm:$0xff]  ;;  %v2695_v17 = vpack.c.bf16 %v101_v6, %v97_v4 }
  0x48   :  { %1786 = vmatpush1.bf16.msra.mxu0 %v2663_v43  ;;  %v115_v14 = vld [vmem:[#allocation5 + $0x1a0] sm:$0xff]  ;;  %v124_v20 = vld [vmem:[#allocation5 + $0x1e8] sm:$0xff]  ;;  %v2703_v21 = vpack.c.bf16 %v110_v8, %v106_v7  ;;  %v105_v22 = vld [vmem:[#allocation5 + $0x150] sm:$0xff] }
  0x49   :  { %1788 = vmatprep.subr.bf16.mxu0 %v2668_v47  ;;  %v2700_v19 = vld [vmem:[%s3067_s1] sm:$0xff]  ;;  %v109_v24 = vld [vmem:[#allocation5 + $0x170] sm:$0xff]  ;;  %v114_v25 = vld [vmem:[#allocation5 + $0x198] sm:$0xff]  ;;  %v2709_v30 = vpack.c.bf16 %v115_v14, %v111_v12  ;;  %v2712_v32 = vpack.c.bf16 %v124_v20, %v120_v16 }
  0x4a   :  { %1818 = vmatpush1.bf16.msra.mxu1 %v2683_v63  ;;  %vm301_vm0 = vcmp.gt.s32.totalorder %v2700_v19, 0  ;;  %vm483_vm1 = vcmp.gt.s32.totalorder %v2700_v19, 1  ;;  %v118_v28 = vld [vmem:[#allocation5 + $0x1b8] sm:$0xff]  ;;  %v119_v33 = vld [vmem:[#allocation5 + $0x1c0] sm:$0xff]  ;;  %v2715_v36 = vpack.c.bf16 %v109_v24, %v105_v22  ;;  %v113_v40 = vld [vmem:[#allocation5 + $0x190] sm:$0xff]  ;;  %vm1029_vm2 = vcmp.gt.s32.totalorder %v2700_v19, 4 }
  0x4b   :  { %1820 = vmatprep.subr.bf16.mxu1 %v2686_v3  ;;  %v302_v29 = vsel %vm301_vm0, 1, %v2551_v1  ;;  %v123_v35 = vld [vmem:[#allocation5 + $0x1e0] sm:$0xff]  ;;  %v484_v37 = vsel %vm483_vm1, 1, %v2551_v1  ;;  %v2719_v39 = vpack.c.bf16 %v118_v28, %v114_v25  ;;  %v117_v41 = vld [vmem:[#allocation5 + $0x1b0] sm:$0xff]  ;;  %v122_v42 = vld [vmem:[#allocation5 + $0x1d8] sm:$0xff]  ;;  %v1030_v50 = vsel %vm1029_vm2, 1, %v2551_v1 }
  0x4c   :  { %1790 = vmatpush1.bf16.msra.mxu0 %v2677_v56  ;;  %304 = vperm.xlu0 %2319, %v302_v29   ;;  %v126_v44 = vld [vmem:[#allocation5 + $0x1f8] sm:$0xff]  ;;  %v2723_v45 = vpack.c.bf16 %v123_v35, %v119_v33  ;;  %v2727_v48 = vpack.c.bf16 %v117_v41, %v113_v40  ;;  %v121_v52 = vld [vmem:[#allocation5 + $0x1d0] sm:$0xff]  ;;  %vm1393_vm3 = vcmp.gt.s32.totalorder %v2700_v19, 6  ;;  %v127_v58 = vld [vmem:[#allocation2] sm:$0xff]  ;;  %vm665_vm5 = vcmp.gt.s32.totalorder %v2700_v19, 2 }
  0x4d   :  { %1792 = vmatprep.subr.bf16.mxu0 %v2680_v59  ;;  %v2731_v51 = vpack.c.bf16 %v126_v44, %v122_v42  ;;  %v125_v54 = vld [vmem:[#allocation5 + $0x1f0] sm:$0xff]  ;;  %v1394_v57 = vsel %vm1393_vm3, 1, %v2551_v1  ;;  %v128_v60 = vld [vmem:[#allocation2 + $0x8] sm:$0xff]  ;;  %v130_v20 = vld [vmem:[#allocation2 + $0x18] sm:$0xff]  ;;  %vm847_vm6 = vcmp.gt.s32.totalorder %v2700_v19, 3  ;;  %vm1211_vm7 = vcmp.gt.s32.totalorder %v2700_v19, 5 }
  0x4e   :  { %1822 = vmatpush1.bf16.msra.mxu1 %v2695_v17  ;;  %v2736_v55 = vpack.c.bf16 %v125_v54, %v121_v52  ;;  %v129_v8 = vld [vmem:[#allocation2 + $0x10] sm:$0xff]  ;;  %vm1575_vm8 = vcmp.gt.s32.totalorder %v2700_v19, 7 }
  0x4f   :  { %1824 = vmatprep.subr.bf16.mxu1 %v2703_v21 }
  0x50   :  { %1794 = vmatpush1.bf16.msra.mxu0 %v2689_v11  ;;  %486 = vperm.xlu0 %2319, %v484_v37  }
  0x51   :  { %1796 = vmatprep.subr.bf16.mxu0 %v2692_v13 }
  0x52   :  { %1826 = vmatpush1.bf16.msra.mxu1 %v2715_v36 }
  0x53   :  { %1828 = vmatprep.subr.bf16.mxu1 %v2719_v39 }
  0x54   :  { %1798 = vmatpush1.bf16.msra.mxu0 %v2709_v30  ;;  %1032 = vperm.xlu0 %2319, %v1030_v50  }
  0x55   :  { %1800 = vmatprep.subr.bf16.mxu0 %v2712_v32 }
  0x56   :  { %1830 = vmatpush1.bf16.msra.mxu1 %v2727_v48 }
  0x57   :  { %1832 = vmatprep.subr.bf16.mxu1 %v2731_v51 }
  0x58   :  { %1802 = vmatpush1.bf16.msra.mxu0 %v2723_v45  ;;  %1396 = vperm.xlu0 %2319, %v1394_v57  }
  0x59   :  { %1836 = vmatprep.subr.bf16.mxu0 %v2632_v5 }
  0x5a   :  { %1834 = vmatpush1.bf16.msra.mxu1 %v2736_v55 }
  0x5b   :  { %196 = vmatmul.mubr.f32.vlgmr.msra.gmra.mrb[0].mxu0 %v2550_v0  ;;  %1868 = vmatprep.subr.bf16.mxu1 %v2645_v23 }
  0x5c   :  { %1838 = vmatpush1.bf16.msra.mxu0 %v2634_v9  ;;  %377 = vmatprep.mubr.f32.mxu0 %v2550_v0 }
  0x5d   :  { %1840 = vmatprep.subr.bf16.mxu0 %v2636_v10  ;;  %267 = vmatmul.mubr.f32.vlgmr.msra.gmra.mrb[0].mxu1 %v2550_v0 }
  0x5e   :  { %1870 = vmatpush1.bf16.msra.mxu1 %v2647_v26  ;;  %448 = vmatprep.mubr.f32.mxu1 %v2550_v0 }
  0x5f   :  { %1872 = vmatprep.subr.bf16.mxu1 %v2657_v34 }
  0x60   :  { %1842 = vmatpush1.bf16.msra.mxu0 %v2640_v15 }
  0x61   :  { %1844 = vmatprep.subr.bf16.mxu0 %v2643_v18 }
  0x62   :  { %1874 = vmatpush1.bf16.msra.mxu1 %v2659_v38 }
  0x63   :  { %1876 = vmatprep.subr.bf16.mxu1 %v2665_v46 }
  0x64   :  { %1846 = vmatpush1.bf16.msra.mxu0 %v2650_v27 }
  0x65   :  { %1848 = vmatprep.subr.bf16.mxu0 %v2654_v31 }
  0x66   :  { %1878 = vmatpush1.bf16.msra.mxu1 %v2671_v49 }
  0x67   :  { %1880 = vmatprep.subr.bf16.mxu1 %v2674_v53 }
  0x68   :  { %1850 = vmatpush1.bf16.msra.mxu0 %v2663_v43 }
  0x69   :  { %1852 = vmatprep.subr.bf16.mxu0 %v2668_v47 }
  0x6a   :  { %1882 = vmatpush1.bf16.msra.mxu1 %v2683_v63 }
  0x6b   :  { %1884 = vmatprep.subr.bf16.mxu1 %v2686_v3 }
  0x6c   :  { %1854 = vmatpush1.bf16.msra.mxu0 %v2677_v56 }
  0x6d   :  { %1856 = vmatprep.subr.bf16.mxu0 %v2680_v59 }
  0x6e   :  { %1886 = vmatpush1.bf16.msra.mxu1 %v2695_v17 }
  0x6f   :  { %1888 = vmatprep.subr.bf16.mxu1 %v2703_v21 }
  0x70   :  { %1858 = vmatpush1.bf16.msra.mxu0 %v2689_v11 }
  0x71   :  { %1860 = vmatprep.subr.bf16.mxu0 %v2692_v13 }
  0x72   :  { %1890 = vmatpush1.bf16.msra.mxu1 %v2715_v36 }
  0x73   :  { %1892 = vmatprep.subr.bf16.mxu1 %v2719_v39 }
  0x74   :  { %1862 = vmatpush1.bf16.msra.mxu0 %v2709_v30 }
  0x75   :  { %1864 = vmatprep.subr.bf16.mxu0 %v2712_v32 }
  0x76   :  { %1894 = vmatpush1.bf16.msra.mxu1 %v2727_v48 }
  0x77   :  { %1896 = vmatprep.subr.bf16.mxu1 %v2731_v51 }
  0x78   :  { %1866 = vmatpush1.bf16.msra.mxu0 %v2723_v45 }
  0x79   :  { %1900 = vmatprep.subr.bf16.mxu0 %v2632_v5 }
  0x7a   :  { %1898 = vmatpush1.bf16.msra.mxu1 %v2736_v55 }
  0x7b   :  { %1932 = vmatprep.subr.bf16.mxu1 %v2645_v23 }
  0xcb   :  { %v305_v57 = vpop.permute.xlu0 %304 }
  0xcc   :  { %vm306_vm4 = vcmp.eq.s32.totalorder %v305_v57, 1 }
 0x12e   :  { %v197_v61 = vpop.f32.mrb[0].mxu0 }
 0x12f   :  { %v273_v62 = vadd.f32 %v197_v61, %v127_v58  ;;  %v199_v2 = vpop.f32.mrb[1].mxu0 }
 0x130   :  { %v274_v4 = vadd.f32 %v199_v2, %v128_v60  ;;  %v268_v12 = vpop.f32.mrb[0].mxu1  ;;  %v848_v2 = vsel %vm847_vm6, 1, %v2551_v1 }
 0x131   :  { %v1692_v6 = vmul.f32 -1.442695, %v273_v62  ;;  %v270_v14 = vpop.f32.mrb[1].mxu1  ;;  %v275_v16 = vadd.f32 %v268_v12, %v129_v8  ;;  %v666_v62 = vsel %vm665_vm5, 1, %v2551_v1  ;;  %v310_v8 = vld [vmem:[#allocation2 + $0x28] sm:$0xff] }
 0x132   :  { %v1693_v7 = vmul.f32 -1.442695, %v274_v4  ;;  %v276_v24 = vadd.f32 %v270_v14, %v130_v20  ;;  %668 = vperm.xlu1 %2320, %v666_v62   ;;  %v1212_v4 = vsel %vm1211_vm7, 1, %v2551_v1 }
 0x133   :  { %2321 = vpow2.f32 %v1692_v6  ;;  %v1694_v22 = vmul.f32 -1.442695, %v275_v16  ;;  %v1576_v6 = vsel %vm1575_vm8, 1, %v2551_v1 }
 0x134   :  { %2323 = vpow2.f32 %v1693_v7  ;;  %v309_v7 = vld [vmem:[#allocation2 + $0x20] sm:$0xff] }
 0x135   :  { %2325 = vpow2.f32 %v1694_v22 }
 0x136   :  { %2327 = vtanh.f32 %v276_v24  ;;  %850 = vperm.xlu1 %2320, %v848_v2  }
 0x13a   :  { %1214 = vperm.xlu1 %2320, %v1212_v4  }
 0x13d   :  { %v2322_v25 = vpop.eup %2321 }
 0x13e   :  { %v2324_v28 = vpop.eup %2323  ;;  %v286_v29 = vadd.f32 1.0, %v2322_v25  ;;  %1578 = vperm.xlu1 %2320, %v1576_v6  }
 0x13f   :  { %v287_v33 = vadd.f32 1.0, %v2324_v28  ;;  %v2326_v35 = vpop.eup %2325 }
 0x140   :  { %2329 = vrcp.f32 %v286_v29  ;;  %v2328_v37 = vpop.eup %2327  ;;  %v288_v41 = vadd.f32 1.0, %v2326_v35  ;;  %v311_v29 = vld [vmem:[#allocation2 + $0x30] sm:$0xff]  ;;  %v312_v35 = vld [vmem:[#allocation2 + $0x38] sm:$0xff] }
 0x141   :  { %2331 = vrcp.f32 %v287_v33 }
 0x142   :  { %2333 = vrcp.f32 %v288_v41 }
 0x14a   :  { %v2330_v40 = vpop.eup %2329 }
 0x14b   :  { %v2332_v42 = vpop.eup %2331  ;;  %v297_v44 = vmul.f32 %v2330_v40, %v2328_v37 }
 0x14c   :  { %v296_v50 = vmul.f32 0.0, %v2332_v42  ;;  %v2334_v54 = vpop.eup %2333 }
 0x14e   :  { %v2779_v52 = vadd.f32 %v297_v44, %v296_v50 }
 0x150   :  { %2335 = vtanh.f32 %v2779_v52 }
 0x15a   :  { %v2336_v58 = vpop.eup %2335 }
 0x15b   :  { %v300_v60 = vmul.f32 %v2336_v58, %v2334_v54 }
 0x15d   :  { %v2782_v61 = vsel %vm306_vm4, %v300_v60, 0.0  ;;  %1695 = vmatmul.mubr.msk.f32.vlgmr.msra.gmra.mrb[2].mxu0 %vm306_vm4, %v300_v60  ;;  %1696 = vmatmul.mubr.msk.f32.vlgmr.msra.gmra.mrb[2].mxu1 %vm306_vm4, %v300_v60 }
 0x15e   :  { %1902 = vmatpush1.bf16.msra.mxu0 %v2634_v9  ;;  %1934 = vmatpush1.bf16.msra.mxu1 %v2647_v26 }
 0x15f   :  { %1904 = vmatprep.subr.bf16.mxu0 %v2636_v10  ;;  %1936 = vmatprep.subr.bf16.mxu1 %v2657_v34 }
 0x160   :  { %559 = vmatprep.mubr.f32.mxu0 %v2550_v0  ;;  %630 = vmatprep.mubr.f32.mxu1 %v2550_v0 }
 0x162   :  { %1906 = vmatpush1.bf16.msra.mxu0 %v2640_v15  ;;  %1938 = vmatpush1.bf16.msra.mxu1 %v2659_v38 }
 0x163   :  { %1908 = vmatprep.subr.bf16.mxu0 %v2643_v18  ;;  %1940 = vmatprep.subr.bf16.mxu1 %v2665_v46 }
 0x166   :  { %1910 = vmatpush1.bf16.msra.mxu0 %v2650_v27  ;;  %1942 = vmatpush1.bf16.msra.mxu1 %v2671_v49 }
 0x167   :  { %1912 = vmatprep.subr.bf16.mxu0 %v2654_v31  ;;  %1944 = vmatprep.subr.bf16.mxu1 %v2674_v53 }
 0x16a   :  { %1914 = vmatpush1.bf16.msra.mxu0 %v2663_v43  ;;  %1946 = vmatpush1.bf16.msra.mxu1 %v2683_v63 }
 0x16b   :  { %1916 = vmatprep.subr.bf16.mxu0 %v2668_v47  ;;  %1948 = vmatprep.subr.bf16.mxu1 %v2686_v3 }
 0x16e   :  { %1918 = vmatpush1.bf16.msra.mxu0 %v2677_v56  ;;  %1950 = vmatpush1.bf16.msra.mxu1 %v2695_v17 }
 0x16f   :  { %1920 = vmatprep.subr.bf16.mxu0 %v2680_v59  ;;  %1952 = vmatprep.subr.bf16.mxu1 %v2703_v21 }
 0x172   :  { %1922 = vmatpush1.bf16.msra.mxu0 %v2689_v11  ;;  %1954 = vmatpush1.bf16.msra.mxu1 %v2715_v36 }
 0x173   :  { %1924 = vmatprep.subr.bf16.mxu0 %v2692_v13  ;;  %1956 = vmatprep.subr.bf16.mxu1 %v2719_v39 }
 0x176   :  { %1926 = vmatpush1.bf16.msra.mxu0 %v2709_v30  ;;  %1958 = vmatpush1.bf16.msra.mxu1 %v2727_v48 }
 0x177   :  { %1928 = vmatprep.subr.bf16.mxu0 %v2712_v32  ;;  %1960 = vmatprep.subr.bf16.mxu1 %v2731_v51 }
 0x17a   :  { %1930 = vmatpush1.bf16.msra.mxu0 %v2723_v45  ;;  %1962 = vmatpush1.bf16.msra.mxu1 %v2736_v55 }
 0x17b   :  { %1964 = vmatprep.subr.bf16.mxu0 %v2632_v5  ;;  %1996 = vmatprep.subr.bf16.mxu1 %v2645_v23 }
 0x230   :  { %v379_v12 = vpop.f32.mrb[2].mxu0  ;;  %v450_v14 = vpop.f32.mrb[2].mxu1 }
 0x231   :  { %v455_v16 = vadd.f32 %v379_v12, %v309_v7  ;;  %v381_v20 = vpop.f32.mrb[3].mxu0  ;;  %v452_v22 = vpop.f32.mrb[3].mxu1  ;;  %v457_v33 = vadd.f32 %v450_v14, %v311_v29 }
 0x232   :  { %v456_v24 = vadd.f32 %v381_v20, %v310_v8  ;;  %v458_v19 = vadd.f32 %v452_v22, %v312_v35  ;;  %v487_v7 = vpop.permute.xlu0 %486 }
 0x233   :  { %v1697_v25 = vmul.f32 -1.442695, %v455_v16  ;;  %v1699_v37 = vmul.f32 -1.442695, %v457_v33  ;;  %vm488_vm9 = vcmp.eq.s32.totalorder %v487_v7, 1  ;;  %v493_v33 = vld [vmem:[#allocation2 + $0x50] sm:$0xff] }
 0x234   :  { %v1698_v28 = vmul.f32 -1.442695, %v456_v24 }
 0x235   :  { %2337 = vpow2.f32 %v1697_v25 }
 0x236   :  { %2339 = vpow2.f32 %v1698_v28 }
 0x237   :  { %2341 = vtanh.f32 %v458_v19  ;;  %v494_v19 = vld [vmem:[#allocation2 + $0x58] sm:$0xff] }
 0x238   :  { %2343 = vpow2.f32 %v1699_v37 }
 0x23f   :  { %v2338_v40 = vpop.eup %2337 }
 0x240   :  { %v468_v1 = vadd.f32 1.0, %v2338_v40  ;;  %v2340_v41 = vpop.eup %2339 }
 0x241   :  { %v469_v42 = vadd.f32 1.0, %v2340_v41  ;;  %v2342_v44 = vpop.eup %2341 }
 0x242   :  { %2345 = vrcp.f32 %v468_v1  ;;  %v2344_v50 = vpop.eup %2343 }
 0x243   :  { %2347 = vrcp.f32 %v469_v42  ;;  %v470_v60 = vadd.f32 1.0, %v2344_v50 }
 0x245   :  { %2349 = vrcp.f32 %v470_v60 }
 0x24c   :  { %v2346_v54 = vpop.eup %2345 }
 0x24d   :  { %v479_v57 = vmul.f32 %v2346_v54, %v2342_v44  ;;  %v2348_v58 = vpop.eup %2347 }
 0x24e   :  { %v478_v62 = vmul.f32 %v2348_v58, %v2779_v52  ;;  %v491_v52 = vld [vmem:[#allocation2 + $0x40] sm:$0xff] }
 0x24f   :  { %v2350_v4 = vpop.eup %2349 }
 0x250   :  { %v2827_v2 = vadd.f32 %v479_v57, %v478_v62 }
 0x252   :  { %2351 = vtanh.f32 %v2827_v2 }
 0x25c   :  { %v2352_v6 = vpop.eup %2351 }
 0x25d   :  { %v482_v8 = vmul.f32 %v2352_v6, %v2350_v4 }
 0x25f   :  { %v2831_v12 = vsel %vm488_vm9, %v482_v8, %v2782_v61  ;;  %v492_v61 = vld [vmem:[#allocation2 + $0x48] sm:$0xff]  ;;  %v669_v8 = vpop.permute.xlu1 %668 }
 0x260   :  { %560 = vmatmul.mubr.f32.vlgmr.msra.gmra.mrb[4].mxu0 %v2831_v12  ;;  %631 = vmatmul.mubr.f32.vlgmr.msra.gmra.mrb[4].mxu1 %v2831_v12  ;;  %vm670_vm10 = vcmp.eq.s32.totalorder %v669_v8, 1 }
 0x261   :  { %1966 = vmatpush1.bf16.msra.mxu0 %v2634_v9  ;;  %1998 = vmatpush1.bf16.msra.mxu1 %v2647_v26 }
 0x262   :  { %1968 = vmatprep.subr.bf16.mxu0 %v2636_v10  ;;  %2000 = vmatprep.subr.bf16.mxu1 %v2657_v34 }
 0x263   :  { %741 = vmatprep.mubr.f32.mxu0 %v2550_v0  ;;  %812 = vmatprep.mubr.f32.mxu1 %v2550_v0 }
 0x265   :  { %1970 = vmatpush1.bf16.msra.mxu0 %v2640_v15  ;;  %2002 = vmatpush1.bf16.msra.mxu1 %v2659_v38 }
 0x266   :  { %1972 = vmatprep.subr.bf16.mxu0 %v2643_v18  ;;  %2004 = vmatprep.subr.bf16.mxu1 %v2665_v46 }
 0x269   :  { %1974 = vmatpush1.bf16.msra.mxu0 %v2650_v27  ;;  %2006 = vmatpush1.bf16.msra.mxu1 %v2671_v49 }
 0x26a   :  { %1976 = vmatprep.subr.bf16.mxu0 %v2654_v31  ;;  %2008 = vmatprep.subr.bf16.mxu1 %v2674_v53 }
 0x26d   :  { %1978 = vmatpush1.bf16.msra.mxu0 %v2663_v43  ;;  %2010 = vmatpush1.bf16.msra.mxu1 %v2683_v63 }
 0x26e   :  { %1980 = vmatprep.subr.bf16.mxu0 %v2668_v47  ;;  %2012 = vmatprep.subr.bf16.mxu1 %v2686_v3 }
 0x271   :  { %1982 = vmatpush1.bf16.msra.mxu0 %v2677_v56  ;;  %2014 = vmatpush1.bf16.msra.mxu1 %v2695_v17 }
 0x272   :  { %1984 = vmatprep.subr.bf16.mxu0 %v2680_v59  ;;  %2016 = vmatprep.subr.bf16.mxu1 %v2703_v21 }
 0x275   :  { %1986 = vmatpush1.bf16.msra.mxu0 %v2689_v11  ;;  %2018 = vmatpush1.bf16.msra.mxu1 %v2715_v36 }
 0x276   :  { %1988 = vmatprep.subr.bf16.mxu0 %v2692_v13  ;;  %2020 = vmatprep.subr.bf16.mxu1 %v2719_v39 }
 0x279   :  { %1990 = vmatpush1.bf16.msra.mxu0 %v2709_v30  ;;  %2022 = vmatpush1.bf16.msra.mxu1 %v2727_v48 }
 0x27a   :  { %1992 = vmatprep.subr.bf16.mxu0 %v2712_v32  ;;  %2024 = vmatprep.subr.bf16.mxu1 %v2731_v51 }
 0x27d   :  { %1994 = vmatpush1.bf16.msra.mxu0 %v2723_v45  ;;  %2026 = vmatpush1.bf16.msra.mxu1 %v2736_v55 }
 0x27e   :  { %2028 = vmatprep.subr.bf16.mxu0 %v2632_v5  ;;  %2060 = vmatprep.subr.bf16.mxu1 %v2645_v23 }
 0x333   :  { %v561_v14 = vpop.f32.mrb[4].mxu0  ;;  %v632_v16 = vpop.f32.mrb[4].mxu1 }
 0x334   :  { %v637_v20 = vadd.f32 %v561_v14, %v491_v52  ;;  %v563_v22 = vpop.f32.mrb[5].mxu0  ;;  %v634_v24 = vpop.f32.mrb[5].mxu1  ;;  %v639_v35 = vadd.f32 %v632_v16, %v493_v33 }
 0x335   :  { %v638_v25 = vadd.f32 %v563_v22, %v492_v61  ;;  %v640_v37 = vadd.f32 %v634_v24, %v494_v19 }
 0x336   :  { %v1700_v28 = vmul.f32 -1.442695, %v637_v20  ;;  %v1702_v40 = vmul.f32 -1.442695, %v639_v35  ;;  %v675_v35 = vld [vmem:[#allocation2 + $0x70] sm:$0xff] }
 0x337   :  { %v1701_v29 = vmul.f32 -1.442695, %v638_v25 }
 0x338   :  { %2353 = vpow2.f32 %v1700_v28 }
 0x339   :  { %2355 = vpow2.f32 %v1701_v29 }
 0x33a   :  { %2357 = vtanh.f32 %v640_v37  ;;  %v676_v37 = vld [vmem:[#allocation2 + $0x78] sm:$0xff] }
 0x33b   :  { %2359 = vpow2.f32 %v1702_v40 }
 0x342   :  { %v2354_v1 = vpop.eup %2353 }
 0x343   :  { %v650_v41 = vadd.f32 1.0, %v2354_v1  ;;  %v2356_v42 = vpop.eup %2355 }
 0x344   :  { %v651_v44 = vadd.f32 1.0, %v2356_v42  ;;  %v2358_v50 = vpop.eup %2357 }
 0x345   :  { %2361 = vrcp.f32 %v650_v41  ;;  %v2360_v54 = vpop.eup %2359 }
 0x346   :  { %2363 = vrcp.f32 %v651_v44  ;;  %v652_v62 = vadd.f32 1.0, %v2360_v54 }
 0x348   :  { %2365 = vrcp.f32 %v652_v62 }
 0x34f   :  { %v2362_v57 = vpop.eup %2361 }
 0x350   :  { %v661_v58 = vmul.f32 %v2362_v57, %v2358_v50  ;;  %v2364_v60 = vpop.eup %2363 }
 0x351   :  { %v660_v4 = vmul.f32 %v2364_v60, %v2827_v2  ;;  %v673_v2 = vld [vmem:[#allocation2 + $0x60] sm:$0xff] }
 0x352   :  { %v2366_v7 = vpop.eup %2365 }
 0x353   :  { %v2870_v6 = vadd.f32 %v661_v58, %v660_v4 }
 0x355   :  { %2367 = vtanh.f32 %v2870_v6 }
 0x35f   :  { %v2368_v52 = vpop.eup %2367 }
 0x360   :  { %v664_v61 = vmul.f32 %v2368_v52, %v2366_v7 }
 0x362   :  { %v2874_v14 = vsel %vm670_vm10, %v664_v61, %v2831_v12  ;;  %v674_v12 = vld [vmem:[#allocation2 + $0x68] sm:$0xff] }
 0x363   :  { %742 = vmatmul.mubr.f32.vlgmr.msra.gmra.mrb[6].mxu0 %v2874_v14  ;;  %813 = vmatmul.mubr.f32.vlgmr.msra.gmra.mrb[6].mxu1 %v2874_v14 }
 0x364   :  { %2030 = vmatpush1.bf16.msra.mxu0 %v2634_v9  ;;  %2062 = vmatpush1.bf16.msra.mxu1 %v2647_v26 }
 0x365   :  { %2032 = vmatprep.subr.bf16.mxu0 %v2636_v10  ;;  %2064 = vmatprep.subr.bf16.mxu1 %v2657_v34 }
 0x366   :  { %923 = vmatprep.mubr.f32.mxu0 %v2550_v0  ;;  %994 = vmatprep.mubr.f32.mxu1 %v2550_v0 }
 0x368   :  { %2034 = vmatpush1.bf16.msra.mxu0 %v2640_v15  ;;  %2066 = vmatpush1.bf16.msra.mxu1 %v2659_v38 }
 0x369   :  { %2036 = vmatprep.subr.bf16.mxu0 %v2643_v18  ;;  %2068 = vmatprep.subr.bf16.mxu1 %v2665_v46 }
 0x36c   :  { %2038 = vmatpush1.bf16.msra.mxu0 %v2650_v27  ;;  %2070 = vmatpush1.bf16.msra.mxu1 %v2671_v49 }
 0x36d   :  { %2040 = vmatprep.subr.bf16.mxu0 %v2654_v31  ;;  %2072 = vmatprep.subr.bf16.mxu1 %v2674_v53 }
 0x370   :  { %2042 = vmatpush1.bf16.msra.mxu0 %v2663_v43  ;;  %2074 = vmatpush1.bf16.msra.mxu1 %v2683_v63 }
 0x371   :  { %2044 = vmatprep.subr.bf16.mxu0 %v2668_v47  ;;  %2076 = vmatprep.subr.bf16.mxu1 %v2686_v3 }
 0x374   :  { %2046 = vmatpush1.bf16.msra.mxu0 %v2677_v56  ;;  %2078 = vmatpush1.bf16.msra.mxu1 %v2695_v17 }
 0x375   :  { %2048 = vmatprep.subr.bf16.mxu0 %v2680_v59  ;;  %2080 = vmatprep.subr.bf16.mxu1 %v2703_v21 }
 0x378   :  { %2050 = vmatpush1.bf16.msra.mxu0 %v2689_v11  ;;  %2082 = vmatpush1.bf16.msra.mxu1 %v2715_v36 }
 0x379   :  { %2052 = vmatprep.subr.bf16.mxu0 %v2692_v13  ;;  %2084 = vmatprep.subr.bf16.mxu1 %v2719_v39 }
 0x37c   :  { %2054 = vmatpush1.bf16.msra.mxu0 %v2709_v30  ;;  %2086 = vmatpush1.bf16.msra.mxu1 %v2727_v48 }
 0x37d   :  { %2056 = vmatprep.subr.bf16.mxu0 %v2712_v32  ;;  %2088 = vmatprep.subr.bf16.mxu1 %v2731_v51 }
 0x380   :  { %2058 = vmatpush1.bf16.msra.mxu0 %v2723_v45  ;;  %2090 = vmatpush1.bf16.msra.mxu1 %v2736_v55 }
 0x381   :  { %2092 = vmatprep.subr.bf16.mxu0 %v2632_v5  ;;  %2124 = vmatprep.subr.bf16.mxu1 %v2645_v23 }
 0x436   :  { %v743_v16 = vpop.f32.mrb[6].mxu0  ;;  %v814_v20 = vpop.f32.mrb[6].mxu1 }
 0x437   :  { %v819_v22 = vadd.f32 %v743_v16, %v673_v2  ;;  %v745_v24 = vpop.f32.mrb[7].mxu0  ;;  %v816_v25 = vpop.f32.mrb[7].mxu1  ;;  %v821_v19 = vadd.f32 %v814_v20, %v675_v35 }
 0x438   :  { %v820_v28 = vadd.f32 %v745_v24, %v674_v12  ;;  %v822_v40 = vadd.f32 %v816_v25, %v676_v37  ;;  %v851_v2 = vpop.permute.xlu1 %850 }
 0x439   :  { %v1703_v29 = vmul.f32 -1.442695, %v819_v22  ;;  %v1705_v1 = vmul.f32 -1.442695, %v821_v19  ;;  %vm852_vm11 = vcmp.eq.s32.totalorder %v851_v2, 1  ;;  %v857_v19 = vld [vmem:[#allocation2 + $0x90] sm:$0xff] }
 0x43a   :  { %v1704_v33 = vmul.f32 -1.442695, %v820_v28 }
 0x43b   :  { %2369 = vpow2.f32 %v1703_v29 }
 0x43c   :  { %2371 = vpow2.f32 %v1704_v33 }
 0x43d   :  { %2373 = vtanh.f32 %v822_v40  ;;  %v858_v40 = vld [vmem:[#allocation2 + $0x98] sm:$0xff] }
 0x43e   :  { %2375 = vpow2.f32 %v1705_v1 }
 0x445   :  { %v2370_v41 = vpop.eup %2369 }
 0x446   :  { %v832_v42 = vadd.f32 1.0, %v2370_v41  ;;  %v2372_v44 = vpop.eup %2371 }
 0x447   :  { %v833_v50 = vadd.f32 1.0, %v2372_v44  ;;  %v2374_v54 = vpop.eup %2373 }
 0x448   :  { %2377 = vrcp.f32 %v832_v42  ;;  %v2376_v57 = vpop.eup %2375 }
 0x449   :  { %2379 = vrcp.f32 %v833_v50  ;;  %v834_v4 = vadd.f32 1.0, %v2376_v57 }
 0x44b   :  { %2381 = vrcp.f32 %v834_v4 }
 0x452   :  { %v2378_v58 = vpop.eup %2377 }
 0x453   :  { %v843_v60 = vmul.f32 %v2378_v58, %v2374_v54  ;;  %v2380_v62 = vpop.eup %2379 }
 0x454   :  { %v842_v7 = vmul.f32 %v2380_v62, %v2870_v6  ;;  %v855_v6 = vld [vmem:[#allocation2 + $0x80] sm:$0xff] }
 0x455   :  { %v2382_v52 = vpop.eup %2381 }
 0x456   :  { %v2913_v8 = vadd.f32 %v843_v60, %v842_v7 }
 0x458   :  { %2383 = vtanh.f32 %v2913_v8 }
 0x462   :  { %v2384_v61 = vpop.eup %2383 }
 0x463   :  { %v846_v12 = vmul.f32 %v2384_v61, %v2382_v52 }
 0x465   :  { %v2917_v16 = vsel %vm852_vm11, %v846_v12, %v2874_v14  ;;  %v856_v14 = vld [vmem:[#allocation2 + $0x88] sm:$0xff] }
 0x466   :  { %924 = vmatmul.mubr.f32.vlgmr.msra.gmra.mrb[8].mxu0 %v2917_v16  ;;  %995 = vmatmul.mubr.f32.vlgmr.msra.gmra.mrb[8].mxu1 %v2917_v16 }
 0x467   :  { %2094 = vmatpush1.bf16.msra.mxu0 %v2634_v9  ;;  %2126 = vmatpush1.bf16.msra.mxu1 %v2647_v26 }
 0x468   :  { %2096 = vmatprep.subr.bf16.mxu0 %v2636_v10  ;;  %2128 = vmatprep.subr.bf16.mxu1 %v2657_v34 }
 0x469   :  { %1105 = vmatprep.mubr.f32.mxu0 %v2550_v0  ;;  %1176 = vmatprep.mubr.f32.mxu1 %v2550_v0 }
 0x46b   :  { %2098 = vmatpush1.bf16.msra.mxu0 %v2640_v15  ;;  %2130 = vmatpush1.bf16.msra.mxu1 %v2659_v38 }
 0x46c   :  { %2100 = vmatprep.subr.bf16.mxu0 %v2643_v18  ;;  %2132 = vmatprep.subr.bf16.mxu1 %v2665_v46 }
 0x46f   :  { %2102 = vmatpush1.bf16.msra.mxu0 %v2650_v27  ;;  %2134 = vmatpush1.bf16.msra.mxu1 %v2671_v49 }
 0x470   :  { %2104 = vmatprep.subr.bf16.mxu0 %v2654_v31  ;;  %2136 = vmatprep.subr.bf16.mxu1 %v2674_v53 }
 0x473   :  { %2106 = vmatpush1.bf16.msra.mxu0 %v2663_v43  ;;  %2138 = vmatpush1.bf16.msra.mxu1 %v2683_v63 }
 0x474   :  { %2108 = vmatprep.subr.bf16.mxu0 %v2668_v47  ;;  %2140 = vmatprep.subr.bf16.mxu1 %v2686_v3 }
 0x477   :  { %2110 = vmatpush1.bf16.msra.mxu0 %v2677_v56  ;;  %2142 = vmatpush1.bf16.msra.mxu1 %v2695_v17 }
 0x478   :  { %2112 = vmatprep.subr.bf16.mxu0 %v2680_v59  ;;  %2144 = vmatprep.subr.bf16.mxu1 %v2703_v21 }
 0x47b   :  { %2114 = vmatpush1.bf16.msra.mxu0 %v2689_v11  ;;  %2146 = vmatpush1.bf16.msra.mxu1 %v2715_v36 }
 0x47c   :  { %2116 = vmatprep.subr.bf16.mxu0 %v2692_v13  ;;  %2148 = vmatprep.subr.bf16.mxu1 %v2719_v39 }
 0x47f   :  { %2118 = vmatpush1.bf16.msra.mxu0 %v2709_v30  ;;  %2150 = vmatpush1.bf16.msra.mxu1 %v2727_v48 }
 0x480   :  { %2120 = vmatprep.subr.bf16.mxu0 %v2712_v32  ;;  %2152 = vmatprep.subr.bf16.mxu1 %v2731_v51 }
 0x483   :  { %2122 = vmatpush1.bf16.msra.mxu0 %v2723_v45  ;;  %2154 = vmatpush1.bf16.msra.mxu1 %v2736_v55 }
 0x484   :  { %2156 = vmatprep.subr.bf16.mxu0 %v2632_v5  ;;  %2188 = vmatprep.subr.bf16.mxu1 %v2645_v23 }
 0x539   :  { %v925_v20 = vpop.f32.mrb[8].mxu0  ;;  %v996_v22 = vpop.f32.mrb[8].mxu1 }
 0x53a   :  { %v1001_v24 = vadd.f32 %v925_v20, %v855_v6  ;;  %v927_v25 = vpop.f32.mrb[9].mxu0  ;;  %v998_v28 = vpop.f32.mrb[9].mxu1  ;;  %v1003_v37 = vadd.f32 %v996_v22, %v857_v19 }
 0x53b   :  { %v1002_v29 = vadd.f32 %v927_v25, %v856_v14  ;;  %v1004_v1 = vadd.f32 %v998_v28, %v858_v40  ;;  %v1033_v6 = vpop.permute.xlu0 %1032 }
 0x53c   :  { %v1706_v33 = vmul.f32 -1.442695, %v1001_v24  ;;  %v1708_v41 = vmul.f32 -1.442695, %v1003_v37  ;;  %vm1034_vm12 = vcmp.eq.s32.totalorder %v1033_v6, 1  ;;  %v1039_v37 = vld [vmem:[#allocation2 + $0xb0] sm:$0xff]  ;;  %v1215_v6 = vpop.permute.xlu1 %1214 }
 0x53d   :  { %v1707_v35 = vmul.f32 -1.442695, %v1002_v29  ;;  %vm1216_vm13 = vcmp.eq.s32.totalorder %v1215_v6, 1 }
 0x53e   :  { %2385 = vpow2.f32 %v1706_v33 }
 0x53f   :  { %2387 = vpow2.f32 %v1707_v35 }
 0x540   :  { %2389 = vtanh.f32 %v1004_v1  ;;  %v1040_v1 = vld [vmem:[#allocation2 + $0xb8] sm:$0xff] }
 0x541   :  { %2391 = vpow2.f32 %v1708_v41 }
 0x548   :  { %v2386_v42 = vpop.eup %2385 }
 0x549   :  { %v1014_v44 = vadd.f32 1.0, %v2386_v42  ;;  %v2388_v50 = vpop.eup %2387 }
 0x54a   :  { %v1015_v54 = vadd.f32 1.0, %v2388_v50  ;;  %v2390_v57 = vpop.eup %2389 }
 0x54b   :  { %2393 = vrcp.f32 %v1014_v44  ;;  %v2392_v58 = vpop.eup %2391 }
 0x54c   :  { %2395 = vrcp.f32 %v1015_v54  ;;  %v1016_v7 = vadd.f32 1.0, %v2392_v58 }
 0x54e   :  { %2397 = vrcp.f32 %v1016_v7 }
 0x555   :  { %v2394_v60 = vpop.eup %2393 }
 0x556   :  { %v1025_v62 = vmul.f32 %v2394_v60, %v2390_v57  ;;  %v2396_v4 = vpop.eup %2395 }
 0x557   :  { %v1024_v52 = vmul.f32 %v2396_v4, %v2913_v8  ;;  %v1037_v8 = vld [vmem:[#allocation2 + $0xa0] sm:$0xff] }
 0x558   :  { %v2398_v2 = vpop.eup %2397 }
 0x559   :  { %v2956_v61 = vadd.f32 %v1025_v62, %v1024_v52 }
 0x55b   :  { %2399 = vtanh.f32 %v2956_v61 }
 0x565   :  { %v2400_v12 = vpop.eup %2399 }
 0x566   :  { %v1028_v14 = vmul.f32 %v2400_v12, %v2398_v2 }
 0x568   :  { %v2960_v20 = vsel %vm1034_vm12, %v1028_v14, %v2917_v16  ;;  %v1038_v16 = vld [vmem:[#allocation2 + $0xa8] sm:$0xff] }
 0x569   :  { %1106 = vmatmul.mubr.f32.vlgmr.msra.gmra.mrb[10].mxu0 %v2960_v20  ;;  %1177 = vmatmul.mubr.f32.vlgmr.msra.gmra.mrb[10].mxu1 %v2960_v20 }
 0x56a   :  { %2158 = vmatpush1.bf16.msra.mxu0 %v2634_v9  ;;  %2190 = vmatpush1.bf16.msra.mxu1 %v2647_v26 }
 0x56b   :  { %2160 = vmatprep.subr.bf16.mxu0 %v2636_v10  ;;  %2192 = vmatprep.subr.bf16.mxu1 %v2657_v34 }
 0x56c   :  { %1287 = vmatprep.mubr.f32.mxu0 %v2550_v0  ;;  %1358 = vmatprep.mubr.f32.mxu1 %v2550_v0 }
 0x56e   :  { %2162 = vmatpush1.bf16.msra.mxu0 %v2640_v15  ;;  %2194 = vmatpush1.bf16.msra.mxu1 %v2659_v38 }
 0x56f   :  { %2164 = vmatprep.subr.bf16.mxu0 %v2643_v18  ;;  %2196 = vmatprep.subr.bf16.mxu1 %v2665_v46 }
 0x572   :  { %2166 = vmatpush1.bf16.msra.mxu0 %v2650_v27  ;;  %2198 = vmatpush1.bf16.msra.mxu1 %v2671_v49 }
 0x573   :  { %2168 = vmatprep.subr.bf16.mxu0 %v2654_v31  ;;  %2200 = vmatprep.subr.bf16.mxu1 %v2674_v53 }
 0x576   :  { %2170 = vmatpush1.bf16.msra.mxu0 %v2663_v43  ;;  %2202 = vmatpush1.bf16.msra.mxu1 %v2683_v63 }
 0x577   :  { %2172 = vmatprep.subr.bf16.mxu0 %v2668_v47  ;;  %2204 = vmatprep.subr.bf16.mxu1 %v2686_v3 }
 0x57a   :  { %2174 = vmatpush1.bf16.msra.mxu0 %v2677_v56  ;;  %2206 = vmatpush1.bf16.msra.mxu1 %v2695_v17 }
 0x57b   :  { %2176 = vmatprep.subr.bf16.mxu0 %v2680_v59  ;;  %2208 = vmatprep.subr.bf16.mxu1 %v2703_v21 }
 0x57e   :  { %2178 = vmatpush1.bf16.msra.mxu0 %v2689_v11  ;;  %2210 = vmatpush1.bf16.msra.mxu1 %v2715_v36 }
 0x57f   :  { %2180 = vmatprep.subr.bf16.mxu0 %v2692_v13  ;;  %2212 = vmatprep.subr.bf16.mxu1 %v2719_v39 }
 0x582   :  { %2182 = vmatpush1.bf16.msra.mxu0 %v2709_v30  ;;  %2214 = vmatpush1.bf16.msra.mxu1 %v2727_v48 }
 0x583   :  { %2184 = vmatprep.subr.bf16.mxu0 %v2712_v32  ;;  %2216 = vmatprep.subr.bf16.mxu1 %v2731_v51 }
 0x586   :  { %2186 = vmatpush1.bf16.msra.mxu0 %v2723_v45  ;;  %2218 = vmatpush1.bf16.msra.mxu1 %v2736_v55 }
 0x587   :  { %2220 = vmatprep.subr.bf16.mxu0 %v2632_v5  ;;  %2252 = vmatprep.subr.bf16.mxu1 %v2645_v23 }
 0x63c   :  { %v1107_v22 = vpop.f32.mrb[10].mxu0  ;;  %v1178_v24 = vpop.f32.mrb[10].mxu1 }
 0x63d   :  { %v1183_v25 = vadd.f32 %v1107_v22, %v1037_v8  ;;  %v1109_v28 = vpop.f32.mrb[11].mxu0  ;;  %v1180_v29 = vpop.f32.mrb[11].mxu1  ;;  %v1185_v40 = vadd.f32 %v1178_v24, %v1039_v37  ;;  %v1583_v22 = vld [vmem:[#allocation7 + $0x8] sm:$0xff] }
 0x63e   :  { %v1184_v33 = vadd.f32 %v1109_v28, %v1038_v16  ;;  %v1186_v41 = vadd.f32 %v1180_v29, %v1040_v1  ;;  %v1582_v16 = vld [vmem:[#allocation7] sm:$0xff]  ;;  %v1584_v28 = vld [vmem:[#allocation7 + $0x10] sm:$0xff]  ;;  %v1585_v29 = vld [vmem:[#allocation7 + $0x18] sm:$0xff] }
 0x63f   :  { %v1709_v35 = vmul.f32 -1.442695, %v1183_v25  ;;  %v1711_v42 = vmul.f32 -1.442695, %v1185_v40  ;;  %v2284_v24 = vpack.c.bf16 %v1583_v22, %v1582_v16  ;;  %v2552_v25 = vmov 0.0|0.0   ;;  %v1588_v40 = vld [vmem:[#allocation7 + $0x30] sm:$0xff] }
 0x640   :  { %v1710_v19 = vmul.f32 -1.442695, %v1184_v33  ;;  %v2287_v33 = vpack.c.bf16 %v1585_v29, %v1584_v28  ;;  %v1589_v1 = vld [vmem:[#allocation7 + $0x38] sm:$0xff] }
 0x641   :  { %2401 = vpow2.f32 %v1709_v35  ;;  %v1586_v35 = vld [vmem:[#allocation7 + $0x20] sm:$0xff] }
 0x642   :  { %2403 = vpow2.f32 %v1710_v19  ;;  %v1587_v19 = vld [vmem:[#allocation7 + $0x28] sm:$0xff] }
 0x643   :  { %2405 = vtanh.f32 %v1186_v41  ;;  %v2290_v37 = vpack.c.bf16 %v1587_v19, %v1586_v35  ;;  %v2293_v41 = vpack.c.bf16 %v1589_v1, %v1588_v40 }
 0x644   :  { %2407 = vpow2.f32 %v1711_v42  ;;  %v1590_v42 = vld [vmem:[#allocation7 + $0x40] sm:$0xff] }
 0x64b   :  { %v2402_v5 = vpop.eup %2401 }
 0x64c   :  { %v1196_v44 = vadd.f32 1.0, %v2402_v5  ;;  %v2404_v23 = vpop.eup %2403  ;;  %v1591_v5 = vld [vmem:[#allocation7 + $0x48] sm:$0xff] }
 0x64d   :  { %v1197_v50 = vadd.f32 1.0, %v2404_v23  ;;  %v2406_v54 = vpop.eup %2405  ;;  %v1592_v23 = vld [vmem:[#allocation7 + $0x50] sm:$0xff] }
 0x64e   :  { %2409 = vrcp.f32 %v1196_v44  ;;  %v2408_v57 = vpop.eup %2407  ;;  %v2296_v44 = vpack.c.bf16 %v1591_v5, %v1590_v42 }
 0x64f   :  { %2411 = vrcp.f32 %v1197_v50  ;;  %v1198_v4 = vadd.f32 1.0, %v2408_v57  ;;  %v1593_v50 = vld [vmem:[#allocation7 + $0x58] sm:$0xff] }
 0x650   :  { %v2299_v57 = vpack.c.bf16 %v1593_v50, %v1592_v23 }
 0x651   :  { %2413 = vrcp.f32 %v1198_v4  ;;  %v1597_v4 = vld [vmem:[#allocation7 + $0x78] sm:$0xff] }
 0x658   :  { %v2410_v58 = vpop.eup %2409 }
 0x659   :  { %v1207_v60 = vmul.f32 %v2410_v58, %v2406_v54  ;;  %v2412_v62 = vpop.eup %2411  ;;  %v1594_v54 = vld [vmem:[#allocation7 + $0x60] sm:$0xff]  ;;  %v1595_v58 = vld [vmem:[#allocation7 + $0x68] sm:$0xff] }
 0x65a   :  { %v1206_v7 = vmul.f32 %v2412_v62, %v2956_v61  ;;  %v1596_v62 = vld [vmem:[#allocation7 + $0x70] sm:$0xff] }
 0x65b   :  { %v2414_v2 = vpop.eup %2413 }
 0x65c   :  { %v2999_v52 = vadd.f32 %v1207_v60, %v1206_v7  ;;  %v2302_v60 = vpack.c.bf16 %v1595_v58, %v1594_v54  ;;  %v2305_v7 = vpack.c.bf16 %v1597_v4, %v1596_v62 }
 0x65e   :  { %2415 = vtanh.f32 %v2999_v52 }
 0x668   :  { %v2416_v12 = vpop.eup %2415 }
 0x669   :  { %v1210_v14 = vmul.f32 %v2416_v12, %v2414_v2  ;;  %v1402_v2 = vld [vmem:[#allocation2 + $0xe8] sm:$0xff] }
 0x66b   :  { %v3003_v8 = vsel %vm1216_vm13, %v1210_v14, %v2960_v20 }
 0x66c   :  { %1288 = vmatmul.mubr.f32.vlgmr.msra.gmra.mrb[12].mxu0 %v3003_v8  ;;  %1359 = vmatmul.mubr.f32.vlgmr.msra.gmra.mrb[12].mxu1 %v3003_v8 }
 0x66d   :  { %2222 = vmatpush1.bf16.msra.mxu0 %v2634_v9  ;;  %2254 = vmatpush1.bf16.msra.mxu1 %v2647_v26  ;;  %v1219_v9 = vld [vmem:[#allocation2 + $0xc0] sm:$0xff] }
 0x66e   :  { %2224 = vmatprep.subr.bf16.mxu0 %v2636_v10  ;;  %2256 = vmatprep.subr.bf16.mxu1 %v2657_v34  ;;  %v1220_v10 = vld [vmem:[#allocation2 + $0xc8] sm:$0xff] }
 0x66f   :  { %1469 = vmatprep.mubr.f32.mxu0 %v2550_v0  ;;  %1540 = vmatprep.mubr.f32.mxu1 %v2550_v0 }
 0x671   :  { %2226 = vmatpush1.bf16.msra.mxu0 %v2640_v15  ;;  %2258 = vmatpush1.bf16.msra.mxu1 %v2659_v38 }
 0x672   :  { %2228 = vmatprep.subr.bf16.mxu0 %v2643_v18  ;;  %2260 = vmatprep.subr.bf16.mxu1 %v2665_v46  ;;  %v1221_v46 = vld [vmem:[#allocation2 + $0xd0] sm:$0xff] }
 0x675   :  { %2230 = vmatpush1.bf16.msra.mxu0 %v2650_v27  ;;  %2262 = vmatpush1.bf16.msra.mxu1 %v2671_v49  ;;  %v1222_v49 = vld [vmem:[#allocation2 + $0xd8] sm:$0xff] }
 0x676   :  { %2232 = vmatprep.subr.bf16.mxu0 %v2654_v31  ;;  %2264 = vmatprep.subr.bf16.mxu1 %v2674_v53 }
 0x679   :  { %2234 = vmatpush1.bf16.msra.mxu0 %v2663_v43  ;;  %2266 = vmatpush1.bf16.msra.mxu1 %v2683_v63 }
 0x67a   :  { %2236 = vmatprep.subr.bf16.mxu0 %v2668_v47  ;;  %2268 = vmatprep.subr.bf16.mxu1 %v2686_v3 }
 0x67d   :  { %2238 = vmatpush1.bf16.msra.mxu0 %v2677_v56  ;;  %2270 = vmatpush1.bf16.msra.mxu1 %v2695_v17 }
 0x67e   :  { %2240 = vmatprep.subr.bf16.mxu0 %v2680_v59  ;;  %2272 = vmatprep.subr.bf16.mxu1 %v2703_v21 }
 0x681   :  { %2242 = vmatpush1.bf16.msra.mxu0 %v2689_v11  ;;  %2274 = vmatpush1.bf16.msra.mxu1 %v2715_v36 }
 0x682   :  { %2244 = vmatprep.subr.bf16.mxu0 %v2692_v13  ;;  %2276 = vmatprep.subr.bf16.mxu1 %v2719_v39 }
 0x685   :  { %2246 = vmatpush1.bf16.msra.mxu0 %v2709_v30  ;;  %2278 = vmatpush1.bf16.msra.mxu1 %v2727_v48 }
 0x686   :  { %2248 = vmatprep.subr.bf16.mxu0 %v2712_v32  ;;  %2280 = vmatprep.subr.bf16.mxu1 %v2731_v51  ;;  %v1397_v51 = vpop.permute.xlu0 %1396 }
 0x687   :  { %vm1398_vm14 = vcmp.eq.s32.totalorder %v1397_v51, 1 }
 0x689   :  { %2250 = vmatpush1.bf16.msra.mxu0 %v2723_v45  ;;  %2282 = vmatpush1.bf16.msra.mxu1 %v2736_v55 }
 0x68a   :  { %2283 = vmatprep.subr.bf16.mxu0 %v2552_v25 }
 0x73f   :  { %v1289_v15 = vpop.f32.mrb[12].mxu0  ;;  %v1360_v18 = vpop.f32.mrb[12].mxu1 }
 0x740   :  { %v1365_v26 = vadd.f32 %v1289_v15, %v1219_v9  ;;  %v1291_v27 = vpop.f32.mrb[13].mxu0  ;;  %v1362_v31 = vpop.f32.mrb[13].mxu1  ;;  %v1367_v47 = vadd.f32 %v1360_v18, %v1221_v46 }
 0x741   :  { %v1366_v34 = vadd.f32 %v1291_v27, %v1220_v10  ;;  %v1368_v53 = vadd.f32 %v1362_v31, %v1222_v49  ;;  %v1404_v27 = vld [vmem:[#allocation2 + $0xf8] sm:$0xff] }
 0x742   :  { %v1712_v38 = vmul.f32 -1.442695, %v1365_v26  ;;  %v1714_v56 = vmul.f32 -1.442695, %v1367_v47 }
 0x743   :  { %v1713_v43 = vmul.f32 -1.442695, %v1366_v34 }
 0x744   :  { %2417 = vpow2.f32 %v1712_v38 }
 0x745   :  { %2419 = vpow2.f32 %v1713_v43 }
 0x746   :  { %2421 = vtanh.f32 %v1368_v53 }
 0x747   :  { %2423 = vpow2.f32 %v1714_v56 }
 0x74e   :  { %v2418_v59 = vpop.eup %2417 }
 0x74f   :  { %v1378_v63 = vadd.f32 1.0, %v2418_v59  ;;  %v2420_v3 = vpop.eup %2419 }
 0x750   :  { %v1379_v11 = vadd.f32 1.0, %v2420_v3  ;;  %v2422_v13 = vpop.eup %2421 }
 0x751   :  { %2425 = vrcp.f32 %v1378_v63  ;;  %v2424_v17 = vpop.eup %2423 }
 0x752   :  { %2427 = vrcp.f32 %v1379_v11  ;;  %v1380_v36 = vadd.f32 1.0, %v2424_v17 }
 0x754   :  { %2429 = vrcp.f32 %v1380_v36 }
 0x75b   :  { %v2426_v21 = vpop.eup %2425 }
 0x75c   :  { %v1389_v30 = vmul.f32 %v2426_v21, %v2422_v13  ;;  %v2428_v32 = vpop.eup %2427  ;;  %v1579_v21 = vpop.permute.xlu1 %1578 }
 0x75d   :  { %v1388_v39 = vmul.f32 %v2428_v32, %v2999_v52  ;;  %v1401_v52 = vld [vmem:[#allocation2 + $0xe0] sm:$0xff]  ;;  %vm1580_vm0 = vcmp.eq.s32.totalorder %v1579_v21, 1 }
 0x75e   :  { %v2430_v48 = vpop.eup %2429 }
 0x75f   :  { %v3040_v45 = vadd.f32 %v1389_v30, %v1388_v39  ;;  %v1718_v39 = vld [vmem:[%s3070_s4] ss:$0 sm:$0xff] }
 0x761   :  { %2431 = vtanh.f32 %v3040_v45 }
 0x76b   :  { %v2432_v55 = vpop.eup %2431 }
 0x76c   :  { %v1392_v61 = vmul.f32 %v2432_v55, %v2430_v48 }
 0x76e   :  { %v3044_v20 = vsel %vm1398_vm14, %v1392_v61, %v3003_v8 }
 0x76f   :  { %1470 = vmatmul.mubr.f32.vlgmr.msra.gmra.mrb[14].mxu0 %v3044_v20  ;;  %1541 = vmatmul.mubr.f32.vlgmr.msra.gmra.mrb[14].mxu1 %v3044_v20 }
 0x770   :  { %2285 = vmatpush3.bf16.msra.mxu0 %v2284_v24  ;;  %1768 = vmatprep.mubr.msk.f32.mxu0 %vm2553_vm15, %v2550_v0  ;;  %v1403_v0 = vld [vmem:[#allocation2 + $0xf0] sm:$0xff] }
 0x771   :  { %2286 = vmatprep.subr.bf16.mxu0 %v2552_v25 }
 0x774   :  { %2288 = vmatpush3.bf16.msra.mxu0 %v2287_v33 }
 0x775   :  { %2289 = vmatprep.subr.bf16.mxu0 %v2552_v25 }
 0x778   :  { %2291 = vmatpush3.bf16.msra.mxu0 %v2290_v37 }
 0x779   :  { %2292 = vmatprep.subr.bf16.mxu0 %v2552_v25 }
 0x77c   :  { %2294 = vmatpush3.bf16.msra.mxu0 %v2293_v41 }
 0x77d   :  { %2295 = vmatprep.subr.bf16.mxu0 %v2552_v25 }
 0x780   :  { %2297 = vmatpush3.bf16.msra.mxu0 %v2296_v44 }
 0x781   :  { %2298 = vmatprep.subr.bf16.mxu0 %v2552_v25 }
 0x784   :  { %2300 = vmatpush3.bf16.msra.mxu0 %v2299_v57 }
 0x785   :  { %2301 = vmatprep.subr.bf16.mxu0 %v2552_v25 }
 0x788   :  { %2303 = vmatpush3.bf16.msra.mxu0 %v2302_v60 }
 0x789   :  { %2304 = vmatprep.subr.bf16.mxu0 %v2552_v25 }
 0x78c   :  { %2306 = vmatpush3.bf16.msra.mxu0 %v2305_v7 }
 0x842   :  { %v1471_v12 = vpop.f32.mrb[14].mxu0  ;;  %v1542_v6 = vpop.f32.mrb[14].mxu1 }
 0x843   :  { %v1547_v14 = vadd.f32 %v1471_v12, %v1401_v52  ;;  %v1473_v8 = vpop.f32.mrb[15].mxu0  ;;  %v1544_v9 = vpop.f32.mrb[15].mxu1  ;;  %v1549_v26 = vadd.f32 %v1542_v6, %v1403_v0 }
 0x844   :  { %v1548_v10 = vadd.f32 %v1473_v8, %v1402_v2  ;;  %v1550_v31 = vadd.f32 %v1544_v9, %v1404_v27 }
 0x845   :  { %v1715_v15 = vmul.f32 -1.442695, %v1547_v14  ;;  %v1717_v34 = vmul.f32 -1.442695, %v1549_v26 }
 0x846   :  { %v1716_v18 = vmul.f32 -1.442695, %v1548_v10 }
 0x847   :  { %2433 = vpow2.f32 %v1715_v15 }
 0x848   :  { %2435 = vpow2.f32 %v1716_v18 }
 0x849   :  { %2437 = vtanh.f32 %v1550_v31 }
 0x84a   :  { %2439 = vpow2.f32 %v1717_v34 }
 0x851   :  { %v2434_v38 = vpop.eup %2433 }
 0x852   :  { %v1560_v43 = vadd.f32 1.0, %v2434_v38  ;;  %v2436_v46 = vpop.eup %2435 }
 0x853   :  { %v1561_v47 = vadd.f32 1.0, %v2436_v46  ;;  %v2438_v49 = vpop.eup %2437 }
 0x854   :  { %2441 = vrcp.f32 %v1560_v43  ;;  %v2440_v53 = vpop.eup %2439 }
 0x855   :  { %2443 = vrcp.f32 %v1561_v47  ;;  %v1562_v3 = vadd.f32 1.0, %v2440_v53 }
 0x857   :  { %2445 = vrcp.f32 %v1562_v3 }
 0x85e   :  { %v2442_v56 = vpop.eup %2441 }
 0x85f   :  { %v1571_v59 = vmul.f32 %v2442_v56, %v2438_v49  ;;  %v2444_v63 = vpop.eup %2443 }
 0x860   :  { %v1570_v11 = vmul.f32 %v2444_v63, %v3040_v45 }
 0x861   :  { %v2446_v17 = vpop.eup %2445 }
 0x862   :  { %v1572_v13 = vadd.f32 %v1571_v59, %v1570_v11 }
 0x864   :  { %2447 = vtanh.f32 %v1572_v13 }
 0x86e   :  { %v2448_v30 = vpop.eup %2447 }
 0x86f   :  { %v1574_v32 = vmul.f32 %v2448_v30, %v2446_v17 }
 0x871   :  { %v1581_v36 = vsel %vm1580_vm0, %v1574_v32, %v3044_v20 }
 0x872   :  { %1769 = vmatmul.mubr.f32.vlgmr.msra.gmra.mrb[16].mxu0 %v1581_v36 }
 0x945   :  { %v1671_v48 = vpop.f32.mrb[16].mxu0 }
 0x946   :  { %v1672_v51 = vadd.f32 %v1718_v39, %v1671_v48  ;;  %v1770_v45 = vpop.f32.mrb[17].mxu0 }
 0x948   :  { %1675 = vst [vmem:[#allocation8] sm:$0xff] %v1672_v51 }
 0x949   :  { %2526 = shalt.err (!%p2523_p0)
}
 0x94a   :  { %s2527_s13 = scalar_lea.hbm %s3071_s5, 128 }
 0x94b   :  { %p2528_p1 = scmp.ne.s32.totalorder %s3071_s5, %s2527_s13  ;;  %p2531_p2 = scmp.lt.u32.totalorder %s2527_s13, %s3071_s5 }
 0x94d   :  { %p2533_p3 = pnand %p2531_p2, %p2528_p1 }
 0x94f   :  { %2536 = shalt.err (!%p2533_p3)
}
 0x950   :  { %1685 = dma.vmem_to_hbm [thread:$0]  %s1683_s9, 128, %s3071_s5, [#allocation4]  }
 0x951   :  { %2541 = dma.done.wait [#allocation4], 128  }
 0x952   :  { %2542 = vsyncadd [#allocation4], 4294967168 }
 0x953   :  { %1689 = vsyncpa [#allocation3], 1 }
 0x954   :  { %1690 = vsyncpa [#allocation6], 1 }
 0x955   :  { %1691 = vsyncpa [#allocation4], 1 }

</bundles_post_ra>
